<compile_context>
chip_gen: v7x
topology: tpu7x:2x2x1
jax: 0.10.0
libtpu: 0.0.40
codegen_flags: <defaults>
</compile_context>

<pallas_src>
import functools

import jax
import jax.numpy as jnp
from jax import lax
from jax.experimental import pallas as pl
from jax.experimental.pallas import tpu as pltpu


def _fused_kernel(x_ref, y_ref, w1_ref, b1_ref, w2_ref, b2_ref,
                  xo_ref, yo_ref, pad_ref, col_ref, *, H, W, C):
    """Fused GuidedResBlock forward for one image.

    x_ref  : (1, C, P)       activations, P = H*W flattened spatial (lanes)
    y_ref  : (1, 1, P)       guide map
    w1_ref : (C, 9*(C+1))    conv1 weights, column k = tap*(C+1) + cin
                             (cin < C -> x channel, cin == C -> summed y taps)
    b1_ref : (C, 1)          conv1 bias
    w2_ref : (C, 9)          score conv weights, [cin, tap]
    b2_ref : (1, 1)          score conv bias
    xo_ref : (1, C, P)       x + relu(conv1(x_cat))
    yo_ref : (1, 1, P)       y + conv2(x_new)
    pad_ref: (C+1, P+2W+2)   zero-padded flat staging buffer (in-kernel halo)
    col_ref: (9*(C+1), P)    im2col stack for conv1
    """
    P = H * W
    off = W + 1  # interior start lane inside pad_ref

    # Per-pixel column index -> masks for the left/right (row-wrap) boundary.
    ww = lax.broadcasted_iota(jnp.int32, (1, P), 1) % W

    def shifted(rows, dh, dw):
        """(rows, P) slab holding input[p + dh*W + dw] with conv zero-padding."""
        slab = pad_ref[pl.ds(0, rows), pl.ds(off + dh * W + dw, P)]
        if dw == 0:
            return slab  # top/bottom taps land in the zero halo of pad_ref
        mask = (ww + dw >= 0) & (ww + dw < W)
        return jnp.where(mask, slab, 0.0)

    x = x_ref[0]   # (C, P)
    yv = y_ref[0]  # (1, P)

    # Stage [x; y] into the zero-padded scratch (halo handled in VMEM).
    pad_ref[...] = jnp.zeros_like(pad_ref)
    pad_ref[pl.ds(0, C), pl.ds(off, P)] = x
    pad_ref[pl.ds(C, 1), pl.ds(off, P)] = yv

    # ---- conv1: build (9*(C+1), P) im2col stack, single MXU matmul --------
    for kh in range(3):
        for kw in range(3):
            t = kh * 3 + kw
            col_ref[pl.ds(t * (C + 1), C + 1), :] = shifted(C + 1, kh - 1, kw - 1)
    acc1 = jnp.dot(w1_ref[...], col_ref[...],
                   preferred_element_type=jnp.float32)            # (C, P)
    x_new = x + jnp.maximum(acc1 + b1_ref[...], 0.0)
    xo_ref[0] = x_new.astype(xo_ref.dtype)

    # ---- conv2 (Cout=1): VPU weighted sum over 9 taps, no MXU --------------
    pad_ref[pl.ds(0, C), pl.ds(off, P)] = x_new                    # reuse halo buf
    w2 = w2_ref[...]                                               # (C, 9)
    acc2 = jnp.zeros((C, P), jnp.float32)
    for kh in range(3):
        for kw in range(3):
            t = kh * 3 + kw
            acc2 = acc2 + shifted(C, kh - 1, kw - 1) * w2[:, t:t + 1]
    y_new = yv + jnp.sum(acc2, axis=0, keepdims=True) + b2_ref[...]
    yo_ref[0] = y_new.astype(yo_ref.dtype)


def guided_res_block(x, y, w1, b1, w2, b2, *, group):
    """NCHW forward of GuidedResBlock via one fused Pallas call.

    x: (N, C, H, W) f32, y: (N, 1, H, W) f32
    w1: (C, C+group, 3, 3) OIHW, b1: (C,), w2: (1, C, 3, 3), b2: (1,)
    """
    N, C, H, W = x.shape
    P = H * W
    sub = C // group

    # --- tiny host-side weight re-layout (removes x_cat entirely) ----------
    # x_cat channel order per group i: [x[i*sub:(i+1)*sub], y]
    x_pos = jnp.array([i * (sub + 1) + j for i in range(group) for j in range(sub)])
    y_pos = jnp.array([i * (sub + 1) + sub for i in range(group)])
    w1x = w1[:, x_pos]                                   # (C, C, 3, 3)
    w1y = w1[:, y_pos].sum(axis=1, keepdims=True)        # (C, 1, 3, 3)
    w1_mat = jnp.transpose(
        jnp.concatenate([w1x, w1y], axis=1), (0, 2, 3, 1)).reshape(C, 9 * (C + 1))
    w2_mat = w2[0].reshape(C, 9)
    b1_col = b1.reshape(C, 1)
    b2_col = b2.reshape(1, 1)

    # NCHW -> (N, C, H*W) is a pure reshape (no transpose / extra HBM traffic).
    x_flat = x.reshape(N, C, P)
    y_flat = y.reshape(N, 1, P)

    kernel = functools.partial(_fused_kernel, H=H, W=W, C=C)
    x_out, y_out = pl.pallas_call(
        kernel,
        out_shape=(jax.ShapeDtypeStruct((N, C, P), x.dtype),
                   jax.ShapeDtypeStruct((N, 1, P), y.dtype)),
        grid_spec=pltpu.PrefetchScalarGridSpec(
            num_scalar_prefetch=0,
            grid=(N,),
            in_specs=[
                pl.BlockSpec((1, C, P), lambda n: (n, 0, 0)),
                pl.BlockSpec((1, 1, P), lambda n: (n, 0, 0)),
                pl.BlockSpec((C, 9 * (C + 1)), lambda n: (0, 0)),
                pl.BlockSpec((C, 1), lambda n: (0, 0)),
                pl.BlockSpec((C, 9), lambda n: (0, 0)),
                pl.BlockSpec((1, 1), lambda n: (0, 0)),
            ],
            out_specs=[
                pl.BlockSpec((1, C, P), lambda n: (n, 0, 0)),
                pl.BlockSpec((1, 1, P), lambda n: (n, 0, 0)),
            ],
            scratch_shapes=[
                pltpu.VMEM((C + 1, P + 2 * W + 2), jnp.float32),  # padded stage
                pltpu.VMEM((9 * (C + 1), P), jnp.float32),        # im2col stack
            ],
        ),
        compiler_params=pltpu.CompilerParams(
            dimension_semantics=("parallel",)),
    )(x_flat, y_flat, w1_mat, b1_col, w2_mat, b2_col)

    return x_out.reshape(N, C, H, W), y_out.reshape(N, 1, H, W)


def _reference(x, y, w1, b1, w2, b2, *, group):
    """Pure-JAX reference (lax.conv, NCHW/OIHW) for correctness checking."""
    xs = jnp.split(x, group, axis=1)
    parts = []
    for xi in xs:
        parts += [xi, y]
    x_cat = jnp.concatenate(parts, axis=1)
    dn = ("NCHW", "OIHW", "NCHW")
    hp = lax.Precision.HIGHEST
    c1 = lax.conv_general_dilated(x_cat, w1, (1, 1), "SAME",
                                  dimension_numbers=dn, precision=hp)
    x_new = x + jax.nn.relu(c1 + b1[None, :, None, None])
    c2 = lax.conv_general_dilated(x_new, w2, (1, 1), "SAME",
                                  dimension_numbers=dn, precision=hp)
    y_new = y + c2 + b2[None, :, None, None]
    return x_new, y_new


if __name__ == "__main__":
    # Module config: channel=4, subchannel=2 -> group=2
    channel, subchannel = 4, 2
    group = channel // subchannel
    N, H, W = 2, 16, 16

    key = jax.random.PRNGKey(0)
    k_x, k_y, k_w1, k_b1, k_w2, k_b2 = jax.random.split(key, 6)

    # Inputs / parameters in the PyTorch NCHW / OIHW convention.
    x = jax.random.normal(k_x, (N, channel, H, W), jnp.float32)
    y = jax.random.normal(k_y, (N, 1, H, W), jnp.float32)
    w1 = 0.1 * jax.random.normal(
        k_w1, (channel, channel + group, 3, 3), jnp.float32)
    b1 = 0.1 * jax.random.normal(k_b1, (channel,), jnp.float32)
    w2 = 0.1 * jax.random.normal(k_w2, (1, channel, 3, 3), jnp.float32)
    b2 = 0.1 * jax.random.normal(k_b2, (1,), jnp.float32)

    x_out, y_out = guided_res_block(x, y, w1, b1, w2, b2, group=group)
    jax.block_until_ready((x_out, y_out))

    x_ref, y_ref = _reference(x, y, w1, b1, w2, b2, group=group)
    assert jnp.allclose(x_out, x_ref, atol=5e-4, rtol=5e-4), (
        float(jnp.max(jnp.abs(x_out - x_ref))))
    assert jnp.allclose(y_out, y_ref, atol=5e-4, rtol=5e-4), (
        float(jnp.max(jnp.abs(y_out - y_ref))))

    print("KERNEL_OK")
</pallas_src>

<mosaic_0001>
module attributes {stable_mosaic.version = 11 : i64} {
  func.func @_fused_kernel(%arg0: i32, %arg1: memref<1x4x256xf32, #tpu.memory_space<vmem>>, %arg2: memref<1x1x256xf32, #tpu.memory_space<vmem>>, %arg3: memref<4x45xf32, #tpu.memory_space<vmem>>, %arg4: memref<4x1xf32, #tpu.memory_space<vmem>>, %arg5: memref<4x9xf32, #tpu.memory_space<vmem>>, %arg6: memref<1x1xf32, #tpu.memory_space<vmem>>, %arg7: memref<1x4x256xf32, #tpu.memory_space<vmem>>, %arg8: memref<1x1x256xf32, #tpu.memory_space<vmem>>, %arg9: memref<5x290xf32, #tpu.memory_space<vmem>>, %arg10: memref<45x256xf32, #tpu.memory_space<vmem>>) attributes {dimension_semantics = [#tpu.dimension_semantics<parallel>], iteration_bounds = array<i64: 2>, scalar_prefetch = 0 : i64, scratch_operands = 2 : i64, tpu.core_type = #tpu.core_type<tc>, window_params = [{transform_indices = @transform_0, window_bounds = array<i64: 1, 4, 256>}, {transform_indices = @transform_1, window_bounds = array<i64: 1, 1, 256>}, {pipeline_mode = #tpu.pipeline_mode<synchronous>, transform_indices = @transform_2, window_bounds = array<i64: 4, 45>}, {pipeline_mode = #tpu.pipeline_mode<synchronous>, transform_indices = @transform_3, window_bounds = array<i64: 4, 1>}, {pipeline_mode = #tpu.pipeline_mode<synchronous>, transform_indices = @transform_4, window_bounds = array<i64: 4, 9>}, {pipeline_mode = #tpu.pipeline_mode<synchronous>, transform_indices = @transform_5, window_bounds = array<i64: 1, 1>}, {transform_indices = @transform_6, window_bounds = array<i64: 1, 4, 256>}, {transform_indices = @transform_7, window_bounds = array<i64: 1, 1, 256>}]} {
    %0 = tpu.iota {dimensions = array<i32: 1>} : vector<1x256xi32>
    %c16_i32 = arith.constant 16 : i32
    %c0_i32 = arith.constant 0 : i32
    %1 = arith.cmpi eq, %c16_i32, %c0_i32 : i32
    %c1_i32 = arith.constant 1 : i32
    %2 = arith.select %1, %c1_i32, %c16_i32 : i32
    %3 = vector.broadcast %2 : i32 to vector<1x256xi32>
    %4 = arith.remsi %0, %3 : vector<1x256xi32>
    %c0_i32_0 = arith.constant 0 : i32
    %5 = vector.broadcast %c0_i32_0 : i32 to vector<1x256xi32>
    %6 = arith.cmpi ne, %4, %5 : vector<1x256xi32>
    %c0_i32_1 = arith.constant 0 : i32
    %7 = vector.broadcast %c0_i32_1 : i32 to vector<1x256xi32>
    %8 = arith.cmpi slt, %4, %7 : vector<1x256xi32>
    %c0_i32_2 = arith.constant 0 : i32
    %9 = arith.cmpi slt, %2, %c0_i32_2 : i32
    %10 = vector.broadcast %9 : i1 to vector<1x256xi1>
    %11 = vector.broadcast %10 : vector<1x256xi1> to vector<1x256xi1>
    %12 = arith.xori %8, %11 : vector<1x256xi1>
    %13 = arith.andi %12, %6 : vector<1x256xi1>
    %14 = vector.broadcast %2 : i32 to vector<1x256xi32>
    %15 = arith.addi %4, %14 : vector<1x256xi32>
    %16 = arith.select %13, %15, %4 : vector<1x256xi1>, vector<1x256xi32>
    %c0 = arith.constant 0 : index
    %c0_3 = arith.constant 0 : index
    %c0_4 = arith.constant 0 : index
    %17 = vector.load %arg1[%c0, %c0_3, %c0_4] : memref<1x4x256xf32, #tpu.memory_space<vmem>>, vector<1x4x256xf32>
    %18 = vector.shape_cast %17 : vector<1x4x256xf32> to vector<4x256xf32>
    %c0_5 = arith.constant 0 : index
    %c0_6 = arith.constant 0 : index
    %c0_7 = arith.constant 0 : index
    %19 = vector.load %arg2[%c0_5, %c0_6, %c0_7] : memref<1x1x256xf32, #tpu.memory_space<vmem>>, vector<1x1x256xf32>
    %20 = vector.shape_cast %19 : vector<1x1x256xf32> to vector<1x256xf32>
    %cst = arith.constant 0.000000e+00 : f32
    %21 = vector.broadcast %cst : f32 to vector<5x290xf32>
    %c0_8 = arith.constant 0 : index
    %c0_9 = arith.constant 0 : index
    %22 = vector.load %arg9[%c0_8, %c0_9] : memref<5x290xf32, #tpu.memory_space<vmem>>, vector<5x290xf32>
    tpu.vector_store %arg9[%c0_8, %c0_9], %21 {strides = array<i32>} : memref<5x290xf32, #tpu.memory_space<vmem>>, vector<5x290xf32>,
    %c0_10 = arith.constant 0 : index
    %c17 = arith.constant 17 : index
    %23 = vector.load %arg9[%c0_10, %c17] : memref<5x290xf32, #tpu.memory_space<vmem>>, vector<4x256xf32>
    tpu.vector_store %arg9[%c0_10, %c17], %18 {strides = array<i32>} : memref<5x290xf32, #tpu.memory_space<vmem>>, vector<4x256xf32>,
    %c4 = arith.constant 4 : index
    %c17_11 = arith.constant 17 : index
    %24 = vector.load %arg9[%c4, %c17_11] : memref<5x290xf32, #tpu.memory_space<vmem>>, vector<1x256xf32>
    tpu.vector_store %arg9[%c4, %c17_11], %20 {strides = array<i32>} : memref<5x290xf32, #tpu.memory_space<vmem>>, vector<1x256xf32>,
    %c0_12 = arith.constant 0 : index
    %c0_13 = arith.constant 0 : index
    %25 = vector.load %arg9[%c0_12, %c0_13] : memref<5x290xf32, #tpu.memory_space<vmem>>, vector<5x256xf32>
    %c-1_i32 = arith.constant -1 : i32
    %26 = vector.broadcast %c-1_i32 : i32 to vector<1x256xi32>
    %27 = arith.addi %16, %26 : vector<1x256xi32>
    %c0_i32_14 = arith.constant 0 : i32
    %28 = vector.broadcast %c0_i32_14 : i32 to vector<1x256xi32>
    %29 = arith.cmpi sge, %27, %28 : vector<1x256xi32>
    %c-1_i32_15 = arith.constant -1 : i32
    %30 = vector.broadcast %c-1_i32_15 : i32 to vector<1x256xi32>
    %31 = arith.addi %16, %30 : vector<1x256xi32>
    %c16_i32_16 = arith.constant 16 : i32
    %32 = vector.broadcast %c16_i32_16 : i32 to vector<1x256xi32>
    %33 = arith.cmpi slt, %31, %32 : vector<1x256xi32>
    %34 = arith.andi %29, %33 : vector<1x256xi1>
    %cst_17 = arith.constant 0.000000e+00 : f32
    %35 = vector.shape_cast %34 : vector<1x256xi1> to vector<1x256xi1>
    %36 = vector.broadcast %35 : vector<1x256xi1> to vector<5x256xi1>
    %37 = vector.broadcast %cst_17 : f32 to vector<5x256xf32>
    %38 = arith.select %36, %25, %37 : vector<5x256xi1>, vector<5x256xf32>
    %c0_18 = arith.constant 0 : index
    %c0_19 = arith.constant 0 : index
    %39 = vector.load %arg10[%c0_18, %c0_19] : memref<45x256xf32, #tpu.memory_space<vmem>>, vector<5x256xf32>
    tpu.vector_store %arg10[%c0_18, %c0_19], %38 {strides = array<i32>} : memref<45x256xf32, #tpu.memory_space<vmem>>, vector<5x256xf32>,
    %c0_20 = arith.constant 0 : index
    %c1 = arith.constant 1 : index
    %40 = vector.load %arg9[%c0_20, %c1] : memref<5x290xf32, #tpu.memory_space<vmem>>, vector<5x256xf32>
    %c5 = arith.constant 5 : index
    %c0_21 = arith.constant 0 : index
    %41 = vector.load %arg10[%c5, %c0_21] : memref<45x256xf32, #tpu.memory_space<vmem>>, vector<5x256xf32>
    tpu.vector_store %arg10[%c5, %c0_21], %40 {strides = array<i32>} : memref<45x256xf32, #tpu.memory_space<vmem>>, vector<5x256xf32>,
    %c0_22 = arith.constant 0 : index
    %c2 = arith.constant 2 : index
    %42 = vector.load %arg9[%c0_22, %c2] : memref<5x290xf32, #tpu.memory_space<vmem>>, vector<5x256xf32>
    %c1_i32_23 = arith.constant 1 : i32
    %43 = vector.broadcast %c1_i32_23 : i32 to vector<1x256xi32>
    %44 = arith.addi %16, %43 : vector<1x256xi32>
    %c0_i32_24 = arith.constant 0 : i32
    %45 = vector.broadcast %c0_i32_24 : i32 to vector<1x256xi32>
    %46 = arith.cmpi sge, %44, %45 : vector<1x256xi32>
    %c1_i32_25 = arith.constant 1 : i32
    %47 = vector.broadcast %c1_i32_25 : i32 to vector<1x256xi32>
    %48 = arith.addi %16, %47 : vector<1x256xi32>
    %c16_i32_26 = arith.constant 16 : i32
    %49 = vector.broadcast %c16_i32_26 : i32 to vector<1x256xi32>
    %50 = arith.cmpi slt, %48, %49 : vector<1x256xi32>
    %51 = arith.andi %46, %50 : vector<1x256xi1>
    %cst_27 = arith.constant 0.000000e+00 : f32
    %52 = vector.shape_cast %51 : vector<1x256xi1> to vector<1x256xi1>
    %53 = vector.broadcast %52 : vector<1x256xi1> to vector<5x256xi1>
    %54 = vector.broadcast %cst_27 : f32 to vector<5x256xf32>
    %55 = arith.select %53, %42, %54 : vector<5x256xi1>, vector<5x256xf32>
    %c10 = arith.constant 10 : index
    %c0_28 = arith.constant 0 : index
    %56 = vector.load %arg10[%c10, %c0_28] : memref<45x256xf32, #tpu.memory_space<vmem>>, vector<5x256xf32>
    tpu.vector_store %arg10[%c10, %c0_28], %55 {strides = array<i32>} : memref<45x256xf32, #tpu.memory_space<vmem>>, vector<5x256xf32>,
    %c0_29 = arith.constant 0 : index
    %c16 = arith.constant 16 : index
    %57 = vector.load %arg9[%c0_29, %c16] : memref<5x290xf32, #tpu.memory_space<vmem>>, vector<5x256xf32>
    %c-1_i32_30 = arith.constant -1 : i32
    %58 = vector.broadcast %c-1_i32_30 : i32 to vector<1x256xi32>
    %59 = arith.addi %16, %58 : vector<1x256xi32>
    %c0_i32_31 = arith.constant 0 : i32
    %60 = vector.broadcast %c0_i32_31 : i32 to vector<1x256xi32>
    %61 = arith.cmpi sge, %59, %60 : vector<1x256xi32>
    %c-1_i32_32 = arith.constant -1 : i32
    %62 = vector.broadcast %c-1_i32_32 : i32 to vector<1x256xi32>
    %63 = arith.addi %16, %62 : vector<1x256xi32>
    %c16_i32_33 = arith.constant 16 : i32
    %64 = vector.broadcast %c16_i32_33 : i32 to vector<1x256xi32>
    %65 = arith.cmpi slt, %63, %64 : vector<1x256xi32>
    %66 = arith.andi %61, %65 : vector<1x256xi1>
    %cst_34 = arith.constant 0.000000e+00 : f32
    %67 = vector.shape_cast %66 : vector<1x256xi1> to vector<1x256xi1>
    %68 = vector.broadcast %67 : vector<1x256xi1> to vector<5x256xi1>
    %69 = vector.broadcast %cst_34 : f32 to vector<5x256xf32>
    %70 = arith.select %68, %57, %69 : vector<5x256xi1>, vector<5x256xf32>
    %c15 = arith.constant 15 : index
    %c0_35 = arith.constant 0 : index
    %71 = vector.load %arg10[%c15, %c0_35] : memref<45x256xf32, #tpu.memory_space<vmem>>, vector<5x256xf32>
    tpu.vector_store %arg10[%c15, %c0_35], %70 {strides = array<i32>} : memref<45x256xf32, #tpu.memory_space<vmem>>, vector<5x256xf32>,
    %c0_36 = arith.constant 0 : index
    %c17_37 = arith.constant 17 : index
    %72 = vector.load %arg9[%c0_36, %c17_37] : memref<5x290xf32, #tpu.memory_space<vmem>>, vector<5x256xf32>
    %c20 = arith.constant 20 : index
    %c0_38 = arith.constant 0 : index
    %73 = vector.load %arg10[%c20, %c0_38] : memref<45x256xf32, #tpu.memory_space<vmem>>, vector<5x256xf32>
    tpu.vector_store %arg10[%c20, %c0_38], %72 {strides = array<i32>} : memref<45x256xf32, #tpu.memory_space<vmem>>, vector<5x256xf32>,
    %c0_39 = arith.constant 0 : index
    %c18 = arith.constant 18 : index
    %74 = vector.load %arg9[%c0_39, %c18] : memref<5x290xf32, #tpu.memory_space<vmem>>, vector<5x256xf32>
    %c1_i32_40 = arith.constant 1 : i32
    %75 = vector.broadcast %c1_i32_40 : i32 to vector<1x256xi32>
    %76 = arith.addi %16, %75 : vector<1x256xi32>
    %c0_i32_41 = arith.constant 0 : i32
    %77 = vector.broadcast %c0_i32_41 : i32 to vector<1x256xi32>
    %78 = arith.cmpi sge, %76, %77 : vector<1x256xi32>
    %c1_i32_42 = arith.constant 1 : i32
    %79 = vector.broadcast %c1_i32_42 : i32 to vector<1x256xi32>
    %80 = arith.addi %16, %79 : vector<1x256xi32>
    %c16_i32_43 = arith.constant 16 : i32
    %81 = vector.broadcast %c16_i32_43 : i32 to vector<1x256xi32>
    %82 = arith.cmpi slt, %80, %81 : vector<1x256xi32>
    %83 = arith.andi %78, %82 : vector<1x256xi1>
    %cst_44 = arith.constant 0.000000e+00 : f32
    %84 = vector.shape_cast %83 : vector<1x256xi1> to vector<1x256xi1>
    %85 = vector.broadcast %84 : vector<1x256xi1> to vector<5x256xi1>
    %86 = vector.broadcast %cst_44 : f32 to vector<5x256xf32>
    %87 = arith.select %85, %74, %86 : vector<5x256xi1>, vector<5x256xf32>
    %c25 = arith.constant 25 : index
    %c0_45 = arith.constant 0 : index
    %88 = vector.load %arg10[%c25, %c0_45] : memref<45x256xf32, #tpu.memory_space<vmem>>, vector<5x256xf32>
    tpu.vector_store %arg10[%c25, %c0_45], %87 {strides = array<i32>} : memref<45x256xf32, #tpu.memory_space<vmem>>, vector<5x256xf32>,
    %c0_46 = arith.constant 0 : index
    %c32 = arith.constant 32 : index
    %89 = vector.load %arg9[%c0_46, %c32] : memref<5x290xf32, #tpu.memory_space<vmem>>, vector<5x256xf32>
    %c-1_i32_47 = arith.constant -1 : i32
    %90 = vector.broadcast %c-1_i32_47 : i32 to vector<1x256xi32>
    %91 = arith.addi %16, %90 : vector<1x256xi32>
    %c0_i32_48 = arith.constant 0 : i32
    %92 = vector.broadcast %c0_i32_48 : i32 to vector<1x256xi32>
    %93 = arith.cmpi sge, %91, %92 : vector<1x256xi32>
    %c-1_i32_49 = arith.constant -1 : i32
    %94 = vector.broadcast %c-1_i32_49 : i32 to vector<1x256xi32>
    %95 = arith.addi %16, %94 : vector<1x256xi32>
    %c16_i32_50 = arith.constant 16 : i32
    %96 = vector.broadcast %c16_i32_50 : i32 to vector<1x256xi32>
    %97 = arith.cmpi slt, %95, %96 : vector<1x256xi32>
    %98 = arith.andi %93, %97 : vector<1x256xi1>
    %cst_51 = arith.constant 0.000000e+00 : f32
    %99 = vector.shape_cast %98 : vector<1x256xi1> to vector<1x256xi1>
    %100 = vector.broadcast %99 : vector<1x256xi1> to vector<5x256xi1>
    %101 = vector.broadcast %cst_51 : f32 to vector<5x256xf32>
    %102 = arith.select %100, %89, %101 : vector<5x256xi1>, vector<5x256xf32>
    %c30 = arith.constant 30 : index
    %c0_52 = arith.constant 0 : index
    %103 = vector.load %arg10[%c30, %c0_52] : memref<45x256xf32, #tpu.memory_space<vmem>>, vector<5x256xf32>
    tpu.vector_store %arg10[%c30, %c0_52], %102 {strides = array<i32>} : memref<45x256xf32, #tpu.memory_space<vmem>>, vector<5x256xf32>,
    %c0_53 = arith.constant 0 : index
    %c33 = arith.constant 33 : index
    %104 = vector.load %arg9[%c0_53, %c33] : memref<5x290xf32, #tpu.memory_space<vmem>>, vector<5x256xf32>
    %c35 = arith.constant 35 : index
    %c0_54 = arith.constant 0 : index
    %105 = vector.load %arg10[%c35, %c0_54] : memref<45x256xf32, #tpu.memory_space<vmem>>, vector<5x256xf32>
    tpu.vector_store %arg10[%c35, %c0_54], %104 {strides = array<i32>} : memref<45x256xf32, #tpu.memory_space<vmem>>, vector<5x256xf32>,
    %c0_55 = arith.constant 0 : index
    %c34 = arith.constant 34 : index
    %106 = vector.load %arg9[%c0_55, %c34] : memref<5x290xf32, #tpu.memory_space<vmem>>, vector<5x256xf32>
    %c1_i32_56 = arith.constant 1 : i32
    %107 = vector.broadcast %c1_i32_56 : i32 to vector<1x256xi32>
    %108 = arith.addi %16, %107 : vector<1x256xi32>
    %c0_i32_57 = arith.constant 0 : i32
    %109 = vector.broadcast %c0_i32_57 : i32 to vector<1x256xi32>
    %110 = arith.cmpi sge, %108, %109 : vector<1x256xi32>
    %c1_i32_58 = arith.constant 1 : i32
    %111 = vector.broadcast %c1_i32_58 : i32 to vector<1x256xi32>
    %112 = arith.addi %16, %111 : vector<1x256xi32>
    %c16_i32_59 = arith.constant 16 : i32
    %113 = vector.broadcast %c16_i32_59 : i32 to vector<1x256xi32>
    %114 = arith.cmpi slt, %112, %113 : vector<1x256xi32>
    %115 = arith.andi %110, %114 : vector<1x256xi1>
    %cst_60 = arith.constant 0.000000e+00 : f32
    %116 = vector.shape_cast %115 : vector<1x256xi1> to vector<1x256xi1>
    %117 = vector.broadcast %116 : vector<1x256xi1> to vector<5x256xi1>
    %118 = vector.broadcast %cst_60 : f32 to vector<5x256xf32>
    %119 = arith.select %117, %106, %118 : vector<5x256xi1>, vector<5x256xf32>
    %c40 = arith.constant 40 : index
    %c0_61 = arith.constant 0 : index
    %120 = vector.load %arg10[%c40, %c0_61] : memref<45x256xf32, #tpu.memory_space<vmem>>, vector<5x256xf32>
    tpu.vector_store %arg10[%c40, %c0_61], %119 {strides = array<i32>} : memref<45x256xf32, #tpu.memory_space<vmem>>, vector<5x256xf32>,
    %c0_62 = arith.constant 0 : index
    %c0_63 = arith.constant 0 : index
    %121 = vector.load %arg3[%c0_62, %c0_63] : memref<4x45xf32, #tpu.memory_space<vmem>>, vector<4x45xf32>
    %c0_64 = arith.constant 0 : index
    %c0_65 = arith.constant 0 : index
    %122 = vector.load %arg10[%c0_64, %c0_65] : memref<45x256xf32, #tpu.memory_space<vmem>>, vector<45x256xf32>
    %cst_66 = arith.constant dense<0.000000e+00> : vector<4x256xf32>
    %123 = tpu.matmul %121, %122, %cst_66 {dimension_numbers = #tpu.dot_dimension_numbers<[1], [0], [0], [1], [0, 0, 1, 1], [], []>} : vector<4x45xf32>, vector<45x256xf32>, vector<4x256xf32> -> vector<4x256xf32>
    %c0_67 = arith.constant 0 : index
    %c0_68 = arith.constant 0 : index
    %124 = vector.load %arg4[%c0_67, %c0_68] : memref<4x1xf32, #tpu.memory_space<vmem>>, vector<4x1xf32>
    %125 = vector.broadcast %124 : vector<4x1xf32> to vector<4x256xf32>
    %126 = arith.addf %123, %125 : vector<4x256xf32>
    %cst_69 = arith.constant 0.000000e+00 : f32
    %127 = vector.broadcast %cst_69 : f32 to vector<4x256xf32>
    %128 = arith.maximumf %126, %127 : vector<4x256xf32>
    %129 = arith.addf %18, %128 : vector<4x256xf32>
    %c0_70 = arith.constant 0 : index
    %c0_71 = arith.constant 0 : index
    %c0_72 = arith.constant 0 : index
    %130 = vector.load %arg7[%c0_70, %c0_71, %c0_72] : memref<1x4x256xf32, #tpu.memory_space<vmem>>, vector<1x4x256xf32>
    %131 = vector.shape_cast %130 : vector<1x4x256xf32> to vector<4x256xf32>
    %132 = vector.shape_cast %129 : vector<4x256xf32> to vector<1x4x256xf32>
    tpu.vector_store %arg7[%c0_70, %c0_71, %c0_72], %132 {strides = array<i32>} : memref<1x4x256xf32, #tpu.memory_space<vmem>>, vector<1x4x256xf32>,
    %c0_73 = arith.constant 0 : index
    %c17_74 = arith.constant 17 : index
    %133 = vector.load %arg9[%c0_73, %c17_74] : memref<5x290xf32, #tpu.memory_space<vmem>>, vector<4x256xf32>
    tpu.vector_store %arg9[%c0_73, %c17_74], %129 {strides = array<i32>} : memref<5x290xf32, #tpu.memory_space<vmem>>, vector<4x256xf32>,
    %c0_75 = arith.constant 0 : index
    %c0_76 = arith.constant 0 : index
    %134 = vector.load %arg5[%c0_75, %c0_76] : memref<4x9xf32, #tpu.memory_space<vmem>>, vector<4x9xf32>
    %cst_77 = arith.constant 0.000000e+00 : f32
    %135 = vector.broadcast %cst_77 : f32 to vector<4x256xf32>
    %c0_78 = arith.constant 0 : index
    %c0_79 = arith.constant 0 : index
    %136 = vector.load %arg9[%c0_78, %c0_79] : memref<5x290xf32, #tpu.memory_space<vmem>>, vector<4x256xf32>
    %c-1_i32_80 = arith.constant -1 : i32
    %137 = vector.broadcast %c-1_i32_80 : i32 to vector<1x256xi32>
    %138 = arith.addi %16, %137 : vector<1x256xi32>
    %c0_i32_81 = arith.constant 0 : i32
    %139 = vector.broadcast %c0_i32_81 : i32 to vector<1x256xi32>
    %140 = arith.cmpi sge, %138, %139 : vector<1x256xi32>
    %c-1_i32_82 = arith.constant -1 : i32
    %141 = vector.broadcast %c-1_i32_82 : i32 to vector<1x256xi32>
    %142 = arith.addi %16, %141 : vector<1x256xi32>
    %c16_i32_83 = arith.constant 16 : i32
    %143 = vector.broadcast %c16_i32_83 : i32 to vector<1x256xi32>
    %144 = arith.cmpi slt, %142, %143 : vector<1x256xi32>
    %145 = arith.andi %140, %144 : vector<1x256xi1>
    %cst_84 = arith.constant 0.000000e+00 : f32
    %146 = vector.shape_cast %145 : vector<1x256xi1> to vector<1x256xi1>
    %147 = vector.broadcast %146 : vector<1x256xi1> to vector<4x256xi1>
    %148 = vector.broadcast %cst_84 : f32 to vector<4x256xf32>
    %149 = arith.select %147, %136, %148 : vector<4x256xi1>, vector<4x256xf32>
    %150 = vector.extract_strided_slice %134 {offsets = [0, 0], sizes = [4, 1], strides = [1, 1]} : vector<4x9xf32> to vector<4x1xf32>
    %151 = vector.broadcast %150 : vector<4x1xf32> to vector<4x256xf32>
    %152 = arith.mulf %149, %151 : vector<4x256xf32>
    %153 = arith.addf %135, %152 : vector<4x256xf32>
    %c0_85 = arith.constant 0 : index
    %c1_86 = arith.constant 1 : index
    %154 = vector.load %arg9[%c0_85, %c1_86] : memref<5x290xf32, #tpu.memory_space<vmem>>, vector<4x256xf32>
    %155 = vector.extract_strided_slice %134 {offsets = [0, 1], sizes = [4, 1], strides = [1, 1]} : vector<4x9xf32> to vector<4x1xf32>
    %156 = vector.broadcast %155 : vector<4x1xf32> to vector<4x256xf32>
    %157 = arith.mulf %154, %156 : vector<4x256xf32>
    %158 = arith.addf %153, %157 : vector<4x256xf32>
    %c0_87 = arith.constant 0 : index
    %c2_88 = arith.constant 2 : index
    %159 = vector.load %arg9[%c0_87, %c2_88] : memref<5x290xf32, #tpu.memory_space<vmem>>, vector<4x256xf32>
    %c1_i32_89 = arith.constant 1 : i32
    %160 = vector.broadcast %c1_i32_89 : i32 to vector<1x256xi32>
    %161 = arith.addi %16, %160 : vector<1x256xi32>
    %c0_i32_90 = arith.constant 0 : i32
    %162 = vector.broadcast %c0_i32_90 : i32 to vector<1x256xi32>
    %163 = arith.cmpi sge, %161, %162 : vector<1x256xi32>
    %c1_i32_91 = arith.constant 1 : i32
    %164 = vector.broadcast %c1_i32_91 : i32 to vector<1x256xi32>
    %165 = arith.addi %16, %164 : vector<1x256xi32>
    %c16_i32_92 = arith.constant 16 : i32
    %166 = vector.broadcast %c16_i32_92 : i32 to vector<1x256xi32>
    %167 = arith.cmpi slt, %165, %166 : vector<1x256xi32>
    %168 = arith.andi %163, %167 : vector<1x256xi1>
    %cst_93 = arith.constant 0.000000e+00 : f32
    %169 = vector.shape_cast %168 : vector<1x256xi1> to vector<1x256xi1>
    %170 = vector.broadcast %169 : vector<1x256xi1> to vector<4x256xi1>
    %171 = vector.broadcast %cst_93 : f32 to vector<4x256xf32>
    %172 = arith.select %170, %159, %171 : vector<4x256xi1>, vector<4x256xf32>
    %173 = vector.extract_strided_slice %134 {offsets = [0, 2], sizes = [4, 1], strides = [1, 1]} : vector<4x9xf32> to vector<4x1xf32>
    %174 = vector.broadcast %173 : vector<4x1xf32> to vector<4x256xf32>
    %175 = arith.mulf %172, %174 : vector<4x256xf32>
    %176 = arith.addf %158, %175 : vector<4x256xf32>
    %c0_94 = arith.constant 0 : index
    %c16_95 = arith.constant 16 : index
    %177 = vector.load %arg9[%c0_94, %c16_95] : memref<5x290xf32, #tpu.memory_space<vmem>>, vector<4x256xf32>
    %c-1_i32_96 = arith.constant -1 : i32
    %178 = vector.broadcast %c-1_i32_96 : i32 to vector<1x256xi32>
    %179 = arith.addi %16, %178 : vector<1x256xi32>
    %c0_i32_97 = arith.constant 0 : i32
    %180 = vector.broadcast %c0_i32_97 : i32 to vector<1x256xi32>
    %181 = arith.cmpi sge, %179, %180 : vector<1x256xi32>
    %c-1_i32_98 = arith.constant -1 : i32
    %182 = vector.broadcast %c-1_i32_98 : i32 to vector<1x256xi32>
    %183 = arith.addi %16, %182 : vector<1x256xi32>
    %c16_i32_99 = arith.constant 16 : i32
    %184 = vector.broadcast %c16_i32_99 : i32 to vector<1x256xi32>
    %185 = arith.cmpi slt, %183, %184 : vector<1x256xi32>
    %186 = arith.andi %181, %185 : vector<1x256xi1>
    %cst_100 = arith.constant 0.000000e+00 : f32
    %187 = vector.shape_cast %186 : vector<1x256xi1> to vector<1x256xi1>
    %188 = vector.broadcast %187 : vector<1x256xi1> to vector<4x256xi1>
    %189 = vector.broadcast %cst_100 : f32 to vector<4x256xf32>
    %190 = arith.select %188, %177, %189 : vector<4x256xi1>, vector<4x256xf32>
    %191 = vector.extract_strided_slice %134 {offsets = [0, 3], sizes = [4, 1], strides = [1, 1]} : vector<4x9xf32> to vector<4x1xf32>
    %192 = vector.broadcast %191 : vector<4x1xf32> to vector<4x256xf32>
    %193 = arith.mulf %190, %192 : vector<4x256xf32>
    %194 = arith.addf %176, %193 : vector<4x256xf32>
    %c0_101 = arith.constant 0 : index
    %c17_102 = arith.constant 17 : index
    %195 = vector.load %arg9[%c0_101, %c17_102] : memref<5x290xf32, #tpu.memory_space<vmem>>, vector<4x256xf32>
    %196 = vector.extract_strided_slice %134 {offsets = [0, 4], sizes = [4, 1], strides = [1, 1]} : vector<4x9xf32> to vector<4x1xf32>
    %197 = vector.broadcast %196 : vector<4x1xf32> to vector<4x256xf32>
    %198 = arith.mulf %195, %197 : vector<4x256xf32>
    %199 = arith.addf %194, %198 : vector<4x256xf32>
    %c0_103 = arith.constant 0 : index
    %c18_104 = arith.constant 18 : index
    %200 = vector.load %arg9[%c0_103, %c18_104] : memref<5x290xf32, #tpu.memory_space<vmem>>, vector<4x256xf32>
    %c1_i32_105 = arith.constant 1 : i32
    %201 = vector.broadcast %c1_i32_105 : i32 to vector<1x256xi32>
    %202 = arith.addi %16, %201 : vector<1x256xi32>
    %c0_i32_106 = arith.constant 0 : i32
    %203 = vector.broadcast %c0_i32_106 : i32 to vector<1x256xi32>
    %204 = arith.cmpi sge, %202, %203 : vector<1x256xi32>
    %c1_i32_107 = arith.constant 1 : i32
    %205 = vector.broadcast %c1_i32_107 : i32 to vector<1x256xi32>
    %206 = arith.addi %16, %205 : vector<1x256xi32>
    %c16_i32_108 = arith.constant 16 : i32
    %207 = vector.broadcast %c16_i32_108 : i32 to vector<1x256xi32>
    %208 = arith.cmpi slt, %206, %207 : vector<1x256xi32>
    %209 = arith.andi %204, %208 : vector<1x256xi1>
    %cst_109 = arith.constant 0.000000e+00 : f32
    %210 = vector.shape_cast %209 : vector<1x256xi1> to vector<1x256xi1>
    %211 = vector.broadcast %210 : vector<1x256xi1> to vector<4x256xi1>
    %212 = vector.broadcast %cst_109 : f32 to vector<4x256xf32>
    %213 = arith.select %211, %200, %212 : vector<4x256xi1>, vector<4x256xf32>
    %214 = vector.extract_strided_slice %134 {offsets = [0, 5], sizes = [4, 1], strides = [1, 1]} : vector<4x9xf32> to vector<4x1xf32>
    %215 = vector.broadcast %214 : vector<4x1xf32> to vector<4x256xf32>
    %216 = arith.mulf %213, %215 : vector<4x256xf32>
    %217 = arith.addf %199, %216 : vector<4x256xf32>
    %c0_110 = arith.constant 0 : index
    %c32_111 = arith.constant 32 : index
    %218 = vector.load %arg9[%c0_110, %c32_111] : memref<5x290xf32, #tpu.memory_space<vmem>>, vector<4x256xf32>
    %c-1_i32_112 = arith.constant -1 : i32
    %219 = vector.broadcast %c-1_i32_112 : i32 to vector<1x256xi32>
    %220 = arith.addi %16, %219 : vector<1x256xi32>
    %c0_i32_113 = arith.constant 0 : i32
    %221 = vector.broadcast %c0_i32_113 : i32 to vector<1x256xi32>
    %222 = arith.cmpi sge, %220, %221 : vector<1x256xi32>
    %c-1_i32_114 = arith.constant -1 : i32
    %223 = vector.broadcast %c-1_i32_114 : i32 to vector<1x256xi32>
    %224 = arith.addi %16, %223 : vector<1x256xi32>
    %c16_i32_115 = arith.constant 16 : i32
    %225 = vector.broadcast %c16_i32_115 : i32 to vector<1x256xi32>
    %226 = arith.cmpi slt, %224, %225 : vector<1x256xi32>
    %227 = arith.andi %222, %226 : vector<1x256xi1>
    %cst_116 = arith.constant 0.000000e+00 : f32
    %228 = vector.shape_cast %227 : vector<1x256xi1> to vector<1x256xi1>
    %229 = vector.broadcast %228 : vector<1x256xi1> to vector<4x256xi1>
    %230 = vector.broadcast %cst_116 : f32 to vector<4x256xf32>
    %231 = arith.select %229, %218, %230 : vector<4x256xi1>, vector<4x256xf32>
    %232 = vector.extract_strided_slice %134 {offsets = [0, 6], sizes = [4, 1], strides = [1, 1]} : vector<4x9xf32> to vector<4x1xf32>
    %233 = vector.broadcast %232 : vector<4x1xf32> to vector<4x256xf32>
    %234 = arith.mulf %231, %233 : vector<4x256xf32>
    %235 = arith.addf %217, %234 : vector<4x256xf32>
    %c0_117 = arith.constant 0 : index
    %c33_118 = arith.constant 33 : index
    %236 = vector.load %arg9[%c0_117, %c33_118] : memref<5x290xf32, #tpu.memory_space<vmem>>, vector<4x256xf32>
    %237 = vector.extract_strided_slice %134 {offsets = [0, 7], sizes = [4, 1], strides = [1, 1]} : vector<4x9xf32> to vector<4x1xf32>
    %238 = vector.broadcast %237 : vector<4x1xf32> to vector<4x256xf32>
    %239 = arith.mulf %236, %238 : vector<4x256xf32>
    %240 = arith.addf %235, %239 : vector<4x256xf32>
    %c0_119 = arith.constant 0 : index
    %c34_120 = arith.constant 34 : index
    %241 = vector.load %arg9[%c0_119, %c34_120] : memref<5x290xf32, #tpu.memory_space<vmem>>, vector<4x256xf32>
    %c1_i32_121 = arith.constant 1 : i32
    %242 = vector.broadcast %c1_i32_121 : i32 to vector<1x256xi32>
    %243 = arith.addi %16, %242 : vector<1x256xi32>
    %c0_i32_122 = arith.constant 0 : i32
    %244 = vector.broadcast %c0_i32_122 : i32 to vector<1x256xi32>
    %245 = arith.cmpi sge, %243, %244 : vector<1x256xi32>
    %c1_i32_123 = arith.constant 1 : i32
    %246 = vector.broadcast %c1_i32_123 : i32 to vector<1x256xi32>
    %247 = arith.addi %16, %246 : vector<1x256xi32>
    %c16_i32_124 = arith.constant 16 : i32
    %248 = vector.broadcast %c16_i32_124 : i32 to vector<1x256xi32>
    %249 = arith.cmpi slt, %247, %248 : vector<1x256xi32>
    %250 = arith.andi %245, %249 : vector<1x256xi1>
    %cst_125 = arith.constant 0.000000e+00 : f32
    %251 = vector.shape_cast %250 : vector<1x256xi1> to vector<1x256xi1>
    %252 = vector.broadcast %251 : vector<1x256xi1> to vector<4x256xi1>
    %253 = vector.broadcast %cst_125 : f32 to vector<4x256xf32>
    %254 = arith.select %252, %241, %253 : vector<4x256xi1>, vector<4x256xf32>
    %255 = vector.extract_strided_slice %134 {offsets = [0, 8], sizes = [4, 1], strides = [1, 1]} : vector<4x9xf32> to vector<4x1xf32>
    %256 = vector.broadcast %255 : vector<4x1xf32> to vector<4x256xf32>
    %257 = arith.mulf %254, %256 : vector<4x256xf32>
    %258 = arith.addf %240, %257 : vector<4x256xf32>
    %cst_126 = arith.constant dense<0.000000e+00> : vector<256xf32>
    %259 = vector.multi_reduction <add>, %258, %cst_126 [0] : vector<4x256xf32> to vector<256xf32>
    %260 = vector.shape_cast %259 : vector<256xf32> to vector<1x256xf32>
    %261 = arith.addf %20, %260 : vector<1x256xf32>
    %c0_127 = arith.constant 0 : index
    %c0_128 = arith.constant 0 : index
    %262 = vector.load %arg6[%c0_127, %c0_128] : memref<1x1xf32, #tpu.memory_space<vmem>>, vector<1x1xf32>
    %263 = vector.broadcast %262 : vector<1x1xf32> to vector<1x256xf32>
    %264 = arith.addf %261, %263 : vector<1x256xf32>
    %c0_129 = arith.constant 0 : index
    %c0_130 = arith.constant 0 : index
    %c0_131 = arith.constant 0 : index
    %265 = vector.load %arg8[%c0_129, %c0_130, %c0_131] : memref<1x1x256xf32, #tpu.memory_space<vmem>>, vector<1x1x256xf32>
    %266 = vector.shape_cast %265 : vector<1x1x256xf32> to vector<1x256xf32>
    %267 = vector.shape_cast %264 : vector<1x256xf32> to vector<1x1x256xf32>
    tpu.vector_store %arg8[%c0_129, %c0_130, %c0_131], %267 {strides = array<i32>} : memref<1x1x256xf32, #tpu.memory_space<vmem>>, vector<1x1x256xf32>,
    return
  }
  func.func @transform_0(%arg0: i32) -> (i32, i32, i32) {
    %c0_i32 = arith.constant 0 : i32
    %c0_i32_0 = arith.constant 0 : i32
    %c0_i32_1 = arith.constant 0 : i32
    return %arg0, %c0_i32, %c0_i32_0 : i32, i32, i32
  }
  func.func @transform_1(%arg0: i32) -> (i32, i32, i32) {
    %c0_i32 = arith.constant 0 : i32
    %c0_i32_0 = arith.constant 0 : i32
    %c0_i32_1 = arith.constant 0 : i32
    return %arg0, %c0_i32, %c0_i32_0 : i32, i32, i32
  }
  func.func @transform_2(%arg0: i32) -> (i32, i32) {
    %c0_i32 = arith.constant 0 : i32
    %c0_i32_0 = arith.constant 0 : i32
    %c0_i32_1 = arith.constant 0 : i32
    return %c0_i32, %c0_i32_0 : i32, i32
  }
  func.func @transform_3(%arg0: i32) -> (i32, i32) {
    %c0_i32 = arith.constant 0 : i32
    %c0_i32_0 = arith.constant 0 : i32
    %c0_i32_1 = arith.constant 0 : i32
    return %c0_i32, %c0_i32_0 : i32, i32
  }
  func.func @transform_4(%arg0: i32) -> (i32, i32) {
    %c0_i32 = arith.constant 0 : i32
    %c0_i32_0 = arith.constant 0 : i32
    %c0_i32_1 = arith.constant 0 : i32
    return %c0_i32, %c0_i32_0 : i32, i32
  }
  func.func @transform_5(%arg0: i32) -> (i32, i32) {
    %c0_i32 = arith.constant 0 : i32
    %c0_i32_0 = arith.constant 0 : i32
    %c0_i32_1 = arith.constant 0 : i32
    return %c0_i32, %c0_i32_0 : i32, i32
  }
  func.func @transform_6(%arg0: i32) -> (i32, i32, i32) {
    %c0_i32 = arith.constant 0 : i32
    %c0_i32_0 = arith.constant 0 : i32
    %c0_i32_1 = arith.constant 0 : i32
    return %arg0, %c0_i32, %c0_i32_0 : i32, i32, i32
  }
  func.func @transform_7(%arg0: i32) -> (i32, i32, i32) {
    %c0_i32 = arith.constant 0 : i32
    %c0_i32_0 = arith.constant 0 : i32
    %c0_i32_1 = arith.constant 0 : i32
    return %arg0, %c0_i32, %c0_i32_0 : i32, i32, i32
  }
}

</mosaic_0001>

<bundles_post_ra>
// kernel: tpu_custom_call.1
= control target key start
LH: loop header
LB: loop body
LE: loop exit
PB: predicated region body
PF: predicated region fallthrough
CT: control target
= control target key end

     0   :  { %s1852_s0 = inlined_call_operand.hbm [shape: f32[2,4,256], index: 0, kind: input, shape index: {}]   ;;  %s1853_s1 = inlined_call_operand.vmem [shape: f32[2,1,256], index: 1, kind: input, shape index: {}]   ;;  %s1854_s2 = inlined_call_operand.vmem [shape: f32[4,45], index: 2, kind: input, shape index: {}]   ;;  %s1855_s3 = inlined_call_operand.vmem [shape: f32[4,1], index: 3, kind: input, shape index: {}]   ;;  %s1856_s4 = inlined_call_operand.vmem [shape: f32[4,9], index: 4, kind: input, shape index: {}]   ;;  %s1857_s5 = inlined_call_operand.<no memory space> [shape: f32[1,1], index: 5, kind: input, shape index: {}]   ;;  %s1858_s6 = inlined_call_operand.hbm [shape: f32[2,4,256], index: 6, kind: output, shape index: {0}]   ;;  %s1859_s7 = inlined_call_operand.hbm [shape: f32[2,1,256], index: 7, kind: output, shape index: {1}]  }
   0x1   :  { %v13_v0 = vstv %s1857_s5 }
   0x2   :  { %14 = vst [vmem:[#allocation4] sm:$0x1] %v13_v0 }
   0x3   :  { %15 = vsyncpa [#allocation6], 0 }
   0x4   :  { %17 = vsyncpa [#allocation6 + $0x1], 0 }
   0x5   :  { %18 = vsyncpa [#allocation7], 0 }
   0x6   :  { %20 = vsyncpa [#allocation7 + $0x1], 0 }
   0x7   :  { %21 = vsyncpa [#allocation10], 0 }
   0x8   :  { %23 = vsyncpa [#allocation10 + $0x1], 0  ;;  %s1446_s26 = smov 0   ;;  %s1448_s27 = smov 0  }
   0x9   :  { %s1450_s28 = smov 0   ;;  %s1452_s29 = smov 0  }
   0xa LB: > { %s1467_s5 = sadd.s32 4294967295, %s1377_s29   ;;  %s1125_s30 = sadd.s32 4294967294, %s1377_s29   ;;  %s1377_s29 = sphi %s1452_s29, %s1883_s29   ;;  %s1373_s28 = sphi %s1450_s28, %s1882_s28   ;;  %s1369_s27 = sphi %s1448_s27, %s1881_s27   ;;  %s1365_s26 = sphi %s1446_s26, %s1880_s26  }
   0xb   : > { %s1471_s8 = sadd.s32 1, %s1377_s29   ;;  %s36_s9 = sadd.s32 1, %s1373_s28 }
   0xc   : > { %s33_s10 = ssub.s32 %s1377_s29, %s1471_s8  ;;  %p43_p0 = scmp.ne.s32.totalorder %s1373_s28, %s1369_s27 }
   0xd   : > { %p34_p1 = scmp.eq.s32.totalorder %s33_s10, 0  ;;  %p44_p2 = scmp.eq.s32.totalorder %s1377_s29, 0 }
   0xe   : > { %p49_p3 = scmp.ne.s32.totalorder %s1369_s27, %s1365_s26  ;;  %p50_p4 = scmp.eq.s32.totalorder %s1467_s5, 0 }
   0xf   : > { %s1483_s11 = scalar_select %p34_p1, %s1373_s28, %s36_s9  }
  0x10   : > { %p1485_p5 = por %p44_p2, %p43_p0  ;;  %p1489_p6 = por %p50_p4, %p49_p3 }
  0x11   : > { %p183_p7 = scmp.eq.s32.totalorder %s1467_s5, 1  ;;  %p189_p8 = scmp.eq.s32.totalorder %s1125_s30, 1 }
  0x12   : > { %p1181_p10 = scmp.lt.s32.totalorder %s1377_s29, 2  ;;  %s247_s16 = sand.u32 1, %s1373_s28  }
  0x13   : > { %p1496_p11 = por %p183_p7, %p43_p0  ;;  %p1500_p12 = por %p189_p8, %p49_p3 }
  0x14   : > { %s1147_s17 = sshll.u32 %s1377_s29, 7  ;;  %s1128_s18 = sshll.u32 %s247_s16, 3 }
  0x15   : > { %s1866_s14 = scalar_select %p1496_p11, 1, 0 }
  0x16   : > { %s1867_s15 = scalar_select %p1500_p12, 1, 0 }
  0x17   : > { %s1509_s21 = scalar_lea.hbm %s1852_s0, %s1147_s17  ;;  %s251_s22 = scalar_lea.vmem [#allocation5], %s1128_s18 }
  0x18   : > { %s259_s23 = sshll.u32 %s251_s22, 4  ;;  %p1513_p13 = pnand %p1181_p10, %p1485_p5  ;;  %s1517_s23 = int_to_ptr.vmem [resolvable:$true] %s259_s23 }
  0x19   : > { %s248_s25 = scalar_lea.sflag [#allocation6], %s247_s16  ;;  %s1249_s30 = scalar_lea.hbm %s1509_s21, 128 }
  0x1a   : > { %p1250_p2 = scmp.ne.s32.totalorder %s1509_s21, %s1249_s30  ;;  %p1251_p3 = pneg %p1513_p13 }
  0x1b   : > { %s1254_s12 = scalar_lea.hbm %s1852_s0, 256  ;;  %p1255_p5 = scmp.lt.u32.totalorder %s1509_s21, %s1852_s0 }
  0x1c   : > { %p1252_p4 = pnand %p1251_p3, %p1250_p2  ;;  %p1256_p8 = scmp.lt.u32.totalorder %s1254_s12, %s1249_s30 }
  0x1d   : > { %p1258_p9 = scmp.lt.u32.totalorder %s1249_s30, %s1509_s21 }
  0x1e   : > { %p1253_p7 = pneg %p1252_p4  ;;  %p1257_p10 = por %p1256_p8, %p1255_p5 }
  0x20   : > { %p1259_p0 = por %p1258_p9, %p1257_p10 }
  0x22   : > { %p1260_p1 = pnand %p1259_p0, %p1253_p7 }
  0x24   : > { %1263 = shalt.err (!%p1260_p1)
}
  0x25   : > { %s1264_s16 = scalar_lea.vmem %s1517_s23, 128  ;;  %s1379_s19 = smov [#allocation5]  }
  0x26   : > { %p1265_p2 = scmp.ne.s32.totalorder %s1517_s23, %s1264_s16  ;;  %s1269_s20 = sshll.u32 %s1379_s19, 4  ;;  %s1270_s20 = int_to_ptr.vmem [resolvable:$false] %s1269_s20 }
  0x27   : > { %s1271_s22 = scalar_lea.vmem %s1270_s20, 256  ;;  %p1272_p11 = scmp.lt.s32.totalorder %s1517_s23, %s1270_s20 }
  0x28   : > { %p1267_p4 = pnand %p1265_p2, %p1251_p3  ;;  %p1273_p5 = scmp.lt.s32.totalorder %s1271_s22, %s1264_s16 }
  0x2a   : > { %p1268_p12 = pneg %p1267_p4  ;;  %p1274_p8 = por %p1273_p5, %p1272_p11 }
  0x2c   : > { %p1275_p9 = pnand %p1274_p8, %p1268_p12 }
  0x2e   : > { %1278 = shalt.err (!%p1275_p9)
}
  0x2f   : > { %1173 = dma.hbm_to_vmem [thread:$0]  (!%p1513_p13), %s1509_s21, 128, %s1517_s23, %s248_s25  }
  0x30   : > { %p1869_p0 = scmp.lt.s32.totalorder %s1377_s29, 3  ;;  %p1870_p1 = scmp.ge.s32.totalorder %s1377_s29, 1 }
  0x32   : > { %p272_p3 = pnand %p1870_p1, %p1869_p0 }
  0x33   : > { %s1551_s30 = sand.u32 (!%p272_p3), 1, %s1369_s27  }
  0x34   : > { %275 = sbr.rel (%p272_p3) target bundleno = 918 (0x396), region = 44  ;;  %s1132_s9 = sshll.u32 (!%p272_p3), %s1551_s30, 3 }
  0x35   : > { %s278_s10 = scalar_lea.sflag (!%p272_p3), [#allocation6], %s1551_s30  ;;  %s281_s24 = scalar_lea.vmem (!%p272_p3), [#allocation5], %s1132_s9 }
  0x3b   : > { %1352 = dma.done.wait (%p1489_p6), %s278_s10, 128  }
  0x3c   : > { %1354 = vsyncadd (%p1489_p6), %s278_s10, 4294967168  ;;  %p321_p11 = scmp.lt.s32.totalorder %s1467_s5, 1  ;;  %vm356_vm0 = vcmask 274432   ;;  %v1380_v1 = vmov 0.0   ;;  %v1568_v3 = vld [vmem:[%s281_s24] sm:$0xff]  ;;  %s1381_s13 = smov 17   ;;  %v325_v5 = vlaneseq }
  0x3d   : > { %357 = vst.msk [vmem:[#allocation2 + $0x10] sm:$0x1f] %vm356_vm0, %v1380_v1  ;;  %354 = vst [vmem:[#allocation2] sm:$0x1f] %v1380_v1  ;;  %714 = vmatprep.mubr.f32.mxu0 %v1380_v1  ;;  %v359_v4 = vcombine.high %v1568_v3, %v1568_v3  ;;  %vm364_vm3 = vcmask 138240   ;;  %vm372_vm4 = vcmask 134144  }
  0x3e   : > { %355 = vst [vmem:[#allocation2 + $0x8] sm:$0x1f] %v1380_v1  ;;  %s322_s21 = scalar_select %p321_p11, %s1467_s5, 1  ;;  %vm381_vm1 = vcmp.ge.s32.totalorder %v325_v5, 17  ;;  %vm382_vm2 = vcmp.lt.s32.totalorder %v325_v5, 273  ;;  %vm369_vm6 = vcmask 1043592  }
  0x3f   : > { %362 = vrot.lane.b32.xlu1 %v359_v4, %s1381_s13  ;;  %vm383_vm5 = vmand %vm381_vm1, %vm382_vm2  ;;  %v1580_v9 = vand.u32 127, %v325_v5  ;;  %s1382_s18 = smov 126   ;;  %s1383_s16 = smov 112   ;;  %v633_v55 = vld [vmem:[%s1855_s3] sm:$0xf]  ;;  %v1390_v56 = vmov 0  }
  0x40   : > { %s1135_s23 = sshll.u32 %s322_s21, 1  ;;  %s1384_s19 = smov 110   ;;  %1236 = vset.pattern.permute.xlu1 %v1390_v56  ;;  %vm453_vm9 = vcmask 1031168   ;;  %vm480_vm11 = vcmask 916480   ;;  %vm533_vm13 = vcmask 900096   ;;  %vm1862_vm14 = vcmask 785408  }
  0x41   : > { %s324_s17 = scalar_lea.vmem %s1853_s1, %s1135_s23  ;;  %v1587_v13 = vadd.s32 128, %v1580_v9  ;;  %v332_v16 = vand.u32 15, %v1580_v9  ;;  %s1385_s20 = smov 96   ;;  %vm1863_vm15 = vcmask 769024   ;;  %vm420_vm0 = vcmask 1039360  }
  0x42   : > { %v1566_v2 = vld [vmem:[%s324_s17] sm:$0x3]  ;;  %s1386_s22 = smov 94   ;;  %s1387_s10 = smov 127   ;;  %vm512_vm1 = vcmask 908288   ;;  %vm1861_vm2 = vcmask 777216  }
  0x43   : > { %375 = vrot.lane.b32.xlu0 %v1566_v2, %s1381_s13  ;;  %v339_v14 = vand.u32 15, %v1587_v13  ;;  %v1599_v20 = vadd.s32 4294967295, %v332_v16  ;;  %s1388_s24 = smov 111   ;;  %s1389_s21 = smov 95   ;;  %v1643_v0 = vadd.s32 1, %v332_v16 }
  0x44   : > { %s1686_s23 = scalar_lea.vmem [#allocation8], %s1132_s9  ;;  %s1148_s9 = sshll.u32 %s1467_s5, 7 }
  0x45   : > { %v1595_v18 = vadd.s32 4294967295, %v339_v14  ;;  %vm391_vm8 = vcmp.ge.s32.totalorder %v1599_v20, 0  ;;  %v1635_v57 = vadd.s32 1, %v339_v14  ;;  %vm436_vm12 = vcmp.lt.s32.totalorder %v1643_v0, 16  ;;  %p1871_p12 = scmp.ne.s32.totalorder %s1866_s14, 0 }
  0x47   : > { %360 = vrot.lane.b32.xlu0 %v1568_v3, %s1381_s13  ;;  %vm392_vm7 = vcmp.ge.s32.totalorder %v1595_v18, 0  ;;  %vm437_vm10 = vcmp.lt.s32.totalorder %v1635_v57, 16 }
  0xb1   : > { %v363_v8 = vpop.permute.xlu1 %362 }
  0xb2   : > { %373 = vst.msk [vmem:[#allocation2 + $0x10] sm:$0xf] %vm372_vm4, %v363_v8 }
  0xb5   : > { %v376_v6 = vpop.permute.xlu0 %375 }
  0xb6   : > { %v377_v7 = vrot.slane %v376_v6, 7 }
  0xb8   : > { %v378_v10 = vsel %vm364_vm3, %v377_v7, %v376_v6 }
  0xb9   : > { %385 = vst.msk [vmem:[#allocation2 + $0x4] ss:$8 sm:$0x7] %vm383_vm5, %v378_v10  ;;  %v361_v11 = vpop.permute.xlu0 %360  ;;  %vm643_vm5 = vcmask 1044480  }
  0xba   : > { %v365_v12 = vsel %vm364_vm3, %v361_v11, %v363_v8  ;;  %370 = vst.msk [vmem:[#allocation2] sm:$0xf] %vm369_vm6, %v361_v11 }
  0xbb   : > { %371 = vst [vmem:[#allocation2 + $0x8] sm:$0xf] %v365_v12 }
  0xc0   : > { %v431_v15 = vld [vmem:[#allocation2 + $0x10] sm:$0x1f] }
  0xc1   : > { %451 = vrot.lane.b32.xlu0 %v431_v15, %s1382_s18  ;;  %v470_v19 = vld [vmem:[#allocation2 + $0x10] sm:$0x1f]  ;;  %v468_v22 = vld [vmem:[#allocation2] sm:$0x1f] }
  0xc2   : > { %v430_v17 = vld [vmem:[#allocation2 + $0x8] sm:$0x1f]  ;;  %v429_v24 = vld [vmem:[#allocation2] sm:$0x1f]  ;;  %v523_v29 = vld [vmem:[#allocation2 + $0x10] sm:$0x1f] }
  0xc3   : > { %449 = vrot.lane.b32.xlu1 %v430_v17, %s1382_s18  ;;  %v469_v21 = vld [vmem:[#allocation2 + $0x8] sm:$0x1f]  ;;  %v387_v26 = vld [vmem:[#allocation2] sm:$0x1f]  ;;  %v550_v31 = vld [vmem:[#allocation2 + $0x10] sm:$0x1f] }
  0xc4   : > { %v388_v23 = vld [vmem:[#allocation2 + $0x8] sm:$0x1f]  ;;  %v401_v27 = vsel %vm391_vm8, %v387_v26, 0.0  ;;  %v521_v32 = vld [vmem:[#allocation2] sm:$0x1f] }
  0xc5   : > { %478 = vrot.lane.b32.xlu0 %v470_v19, %s1383_s16  ;;  %v402_v25 = vsel %vm392_vm7, %v388_v23, 0.0  ;;  %v522_v28 = vld [vmem:[#allocation2 + $0x8] sm:$0x1f]  ;;  %403 = vst [vmem:[#allocation3] sm:$0x1f] %v401_v27 }
  0xc6   : > { %404 = vst [vmem:[#allocation3 + $0x8] sm:$0x1f] %v402_v25  ;;  %v549_v30 = vld [vmem:[#allocation2 + $0x8] sm:$0x1f]  ;;  %v548_v33 = vld [vmem:[#allocation2] sm:$0x1f] }
  0xc7   : > { %476 = vrot.lane.b32.xlu1 %v469_v21, %s1383_s16  ;;  %v601_v34 = vld [vmem:[#allocation2 + $0x10] sm:$0x1f]  ;;  %v600_v36 = vld [vmem:[#allocation2 + $0x8] sm:$0x1f]  ;;  %v405_v41 = vld [vmem:[#allocation2] sm:$0x1f] }
  0xc8   : > { %v407_v35 = vld [vmem:[#allocation2 + $0x10] sm:$0x1f]  ;;  %v406_v37 = vld [vmem:[#allocation2 + $0x8] sm:$0x1f]  ;;  %v497_v43 = vld [vmem:[#allocation2] sm:$0x1f] }
  0xc9   : > { %474 = vrot.lane.b32.xlu0 %v468_v22, %s1383_s16  ;;  %v413_v38 = vrot.slane %v407_v35, 3  ;;  %v498_v39 = vld [vmem:[#allocation2 + $0x8] sm:$0x1f]  ;;  %v412_v40 = vrot.slane %v406_v37, 3  ;;  %v411_v44 = vrot.slane %v405_v41, 3  ;;  %v503_v46 = vrot.slane %v497_v43, 4 }
  0xca   : > { %v504_v42 = vrot.slane %v498_v39, 4  ;;  %v499_v45 = vld [vmem:[#allocation2 + $0x10] sm:$0x1f]  ;;  %v578_v49 = vld [vmem:[#allocation2 + $0x8] sm:$0x1f] }
  0xcb   : > { %447 = vrot.lane.b32.xlu1 %v429_v24, %s1382_s18  ;;  %v579_v47 = vld [vmem:[#allocation2 + $0x10] sm:$0x1f]  ;;  %v505_v48 = vrot.slane %v499_v45, 4  ;;  %v577_v51 = vld [vmem:[#allocation2] sm:$0x1f]  ;;  %v584_v52 = vrot.slane %v578_v49, 5 }
  0xcc   : > { %v585_v50 = vrot.slane %v579_v47, 5  ;;  %v583_v53 = vrot.slane %v577_v51, 5  ;;  %v599_v54 = vld [vmem:[#allocation2] sm:$0x1f] }
  0xcd   : > { %529 = vrot.lane.b32.xlu0 %v522_v28, %s1384_s19 }
  0xcf   : > { %531 = vrot.lane.b32.xlu1 %v523_v29, %s1384_s19 }
  0xd1   : > { %556 = vrot.lane.b32.xlu0 %v549_v30, %s1385_s20 }
  0xd3   : > { %558 = vrot.lane.b32.xlu1 %v550_v31, %s1385_s20 }
  0xd5   : > { %527 = vrot.lane.b32.xlu0 %v521_v32, %s1384_s19 }
  0xd7   : > { %554 = vrot.lane.b32.xlu1 %v548_v33, %s1385_s20 }
  0xd9   : > { %609 = vrot.lane.b32.xlu0 %v601_v34, %s1386_s22 }
  0xdb   : > { %607 = vrot.lane.b32.xlu1 %v600_v36, %s1386_s22 }
  0xdd   : > { %418 = vrot.lane.b32.xlu0 %v413_v38, %s1387_s10 }
  0xdf   : > { %416 = vrot.lane.b32.xlu1 %v412_v40, %s1387_s10 }
  0xe1   : > { %508 = vrot.lane.b32.xlu0 %v504_v42, %s1388_s24 }
  0xe3   : > { %414 = vrot.lane.b32.xlu1 %v411_v44, %s1387_s10 }
  0xe5   : > { %506 = vrot.lane.b32.xlu0 %v503_v46, %s1388_s24 }
  0xe7   : > { %510 = vrot.lane.b32.xlu1 %v505_v48, %s1388_s24 }
  0xe9   : > { %590 = vrot.lane.b32.xlu0 %v585_v50, %s1389_s21 }
  0xeb   : > { %588 = vrot.lane.b32.xlu1 %v584_v52, %s1389_s21 }
  0xed   : > { %586 = vrot.lane.b32.xlu0 %v583_v53, %s1389_s21 }
  0xef   : > { %605 = vrot.lane.b32.xlu1 %v599_v54, %s1386_s22 }
  0xf3   : > { %636 = vperm.xlu1 %1236, %v633_v55  }
 0x133   : > { %v452_v58 = vpop.permute.xlu0 %451 }
 0x135   : > { %v450_v59 = vpop.permute.xlu1 %449 }
 0x136   : > { %v455_v60 = vsel %vm453_vm9, %v450_v59, %v452_v58 }
 0x137   : > { %v459_v61 = vsel %vm437_vm10, %v455_v60, 0.0  ;;  %v479_v62 = vpop.permute.xlu0 %478 }
 0x138   : > { %v463_v63 = vrot.slane %v459_v61, 6 }
 0x139   : > { %v477_v1 = vpop.permute.xlu1 %476 }
 0x13a   : > { %467 = vst [vmem:[#allocation3 + $0x18] sm:$0x7c] %v463_v63  ;;  %v482_v4 = vsel %vm480_vm11, %v477_v1, %v479_v62 }
 0x13b   : > { %v486_v6 = vsel %vm392_vm7, %v482_v4, 0.0  ;;  %v475_v7 = vpop.permute.xlu0 %474 }
 0x13c   : > { %v490_v8 = vrot.slane %v486_v6, 1  ;;  %v481_v10 = vsel %vm480_vm11, %v475_v7, %v477_v1 }
 0x13d   : > { %v485_v11 = vsel %vm391_vm8, %v481_v10, 0.0  ;;  %v448_v12 = vpop.permute.xlu1 %447 }
 0x13e   : > { %494 = vst [vmem:[#allocation3 + $0x28] ss:$-12 sps:$4 sm:$0x8f] %v490_v8   ;;  %v489_v9 = vrot.slane %v485_v11, 1  ;;  %v454_v13 = vsel %vm453_vm9, %v448_v12, %v450_v59 }
 0x13f   : > { %v458_v14 = vsel %vm436_vm12, %v454_v13, 0.0  ;;  %v530_v15 = vpop.permute.xlu0 %529 }
 0x140   : > { %493 = vst [vmem:[#allocation3 + $0x20] ss:$-12 sps:$4 sm:$0x8f] %v489_v9   ;;  %v462_v16 = vrot.slane %v458_v14, 6 }
 0x141   : > { %v532_v17 = vpop.permute.xlu1 %531 }
 0x142   : > { %466 = vst [vmem:[#allocation3 + $0x10] sm:$0x7c] %v462_v16  ;;  %v535_v19 = vsel %vm533_vm13, %v530_v15, %v532_v17 }
 0x143   : > { %v539_v21 = vsel %vm437_vm10, %v535_v19, 0.0  ;;  %v557_v22 = vpop.permute.xlu0 %556  ;;  %v620_v19 = vld [vmem:[%s1854_s2] sm:$0xf] }
 0x144   : > { %v543_v23 = vrot.slane %v539_v21, 7  ;;  %v1392_v21 = vmov 1  }
 0x145   : > { %v559_v24 = vpop.permute.xlu1 %558  ;;  %1237 = vset.pattern.permute.xlu0 %v1392_v21 }
 0x146   : > { %547 = vst [vmem:[#allocation3 + $0x38] sm:$0x3e] %v543_v23  ;;  %v562_v25 = vsel %vm1862_vm14, %v557_v22, %v559_v24 }
 0x147   : > { %v566_v26 = vsel %vm392_vm7, %v562_v25, 0.0  ;;  %v528_v27 = vpop.permute.xlu0 %527 }
 0x148   : > { %v570_v28 = vrot.slane %v566_v26, 2  ;;  %v534_v29 = vsel %vm533_vm13, %v528_v27, %v530_v15 }
 0x149   : > { %v538_v30 = vsel %vm436_vm12, %v534_v29, 0.0  ;;  %v555_v31 = vpop.permute.xlu1 %554 }
 0x14a   : > { %574 = vst [vmem:[#allocation3 + $0x48] ss:$-12 sps:$4 sm:$0xc7] %v570_v28   ;;  %v542_v32 = vrot.slane %v538_v30, 7  ;;  %v561_v33 = vsel %vm1862_vm14, %v555_v31, %v557_v22  ;;  %v1393_v22 = vmov 4  }
 0x14b   : > { %v565_v34 = vsel %vm391_vm8, %v561_v33, 0.0  ;;  %v610_v35 = vpop.permute.xlu0 %609  ;;  %1238 = vset.pattern.permute.xlu1 %v1393_v22  ;;  %v742_v33 = vld [vmem:[%s1856_s4] sm:$0xf] }
 0x14c   : > { %546 = vst [vmem:[#allocation3 + $0x30] sm:$0x3e] %v542_v32  ;;  %v569_v36 = vrot.slane %v565_v34, 2  ;;  %v1395_v34 = vmov 5  }
 0x14d   : > { %v608_v37 = vpop.permute.xlu1 %607 }
 0x14e   : > { %573 = vst [vmem:[#allocation3 + $0x40] ss:$-12 sps:$4 sm:$0xc7] %v569_v36   ;;  %v613_v38 = vsel %vm1863_vm15, %v608_v37, %v610_v35  ;;  %v1396_v35 = vmov 2   ;;  %v1397_v36 = vmov 8  }
 0x14f   : > { %v617_v39 = vsel %vm437_vm10, %v613_v38, 0.0  ;;  %v419_v40 = vpop.permute.xlu0 %418  ;;  %v1399_v38 = vmov 6  }
 0x150   : > { %619 = vst [vmem:[#allocation3 + $0x58] sm:$0x1f] %v617_v39 }
 0x151   : > { %v417_v41 = vpop.permute.xlu1 %416 }
 0x152   : > { %v422_v42 = vsel %vm420_vm0, %v417_v41, %v419_v40 }
 0x153   : > { %426 = vst [vmem:[#allocation3 + $0x18] ss:$-12 sps:$4 sm:$0xe3] %v422_v42   ;;  %v509_v43 = vpop.permute.xlu0 %508 }
 0x155   : > { %v415_v44 = vpop.permute.xlu1 %414 }
 0x156   : > { %v421_v45 = vsel %vm420_vm0, %v415_v44, %v417_v41 }
 0x157   : > { %425 = vst [vmem:[#allocation3 + $0x10] ss:$-12 sps:$4 sm:$0xe3] %v421_v45   ;;  %v507_v46 = vpop.permute.xlu0 %506  ;;  %v632_v13 = vld [vmem:[#allocation3 + $0x58] sm:$0x1f] }
 0x158   : > { %v513_v47 = vsel %vm512_vm1, %v507_v46, %v509_v43 }
 0x159   : > { %517 = vst [vmem:[#allocation3 + $0x30] ss:$-12 sps:$4 sm:$0xf1] %v513_v47   ;;  %v511_v48 = vpop.permute.xlu1 %510 }
 0x15a   : > { %v514_v49 = vsel %vm512_vm1, %v509_v43, %v511_v48  ;;  %v622_v50 = vld [vmem:[#allocation3 + $0x8] sm:$0xff]  ;;  %v624_v51 = vld [vmem:[#allocation3 + $0x18] sm:$0xff] }
 0x15b   : > { %518 = vst [vmem:[#allocation3 + $0x38] ss:$-12 sps:$4 sm:$0xf1] %v514_v49   ;;  %v591_v52 = vpop.permute.xlu0 %590  ;;  %v1150_v53 = vpack.c.bf16 %v624_v51, %v622_v50 }
 0x15d   : > { %v589_v54 = vpop.permute.xlu1 %588  ;;  %1151 = vmatprep.subr.bf16.mxu0 %v1150_v53 }
 0x15e   : > { %v594_v55 = vsel %vm1861_vm2, %v589_v54, %v591_v52  ;;  %v621_v58 = vld [vmem:[#allocation3] sm:$0xff]  ;;  %v623_v59 = vld [vmem:[#allocation3 + $0x10] sm:$0xff] }
 0x15f   : > { %598 = vst [vmem:[#allocation3 + $0x48] sm:$0xf8] %v594_v55  ;;  %v587_v60 = vpop.permute.xlu0 %586  ;;  %v1152_v61 = vpack.c.bf16 %v623_v59, %v621_v58  ;;  %v962_v58 = vld [vmem:[#allocation4] sm:$0x1] }
 0x160   : > { %v593_v62 = vsel %vm1861_vm2, %v587_v60, %v589_v54  ;;  %v625_v1 = vld [vmem:[#allocation3 + $0x20] sm:$0xff]  ;;  %v627_v4 = vld [vmem:[#allocation3 + $0x30] sm:$0xff]  ;;  %vm1391_vm2 = vmmov 1  }
 0x161   : > { %597 = vst [vmem:[#allocation3 + $0x40] sm:$0xf8] %v593_v62  ;;  %v606_v63 = vpop.permute.xlu1 %605  ;;  %1153 = vmatpush1.bf16.msra.mxu0 %v1152_v61  ;;  %v1156_v12 = vpack.c.bf16 %v627_v4, %v625_v1  ;;  %vm1159_vm14 = vmpackc.low %vm643_vm5, %vm1391_vm2 }
 0x162   : > { %v612_v6 = vsel %vm1863_vm15, %v606_v63, %v608_v37  ;;  %v626_v7 = vld [vmem:[#allocation3 + $0x28] sm:$0xff]  ;;  %v628_v8 = vld [vmem:[#allocation3 + $0x38] sm:$0xff]  ;;  %vm639_vm15 = vcmask 367616   ;;  %v1398_v37 = vmov 3  }
 0x163   : > { %v616_v10 = vsel %vm436_vm12, %v612_v6, 0.0  ;;  %v1154_v11 = vpack.c.bf16 %v628_v8, %v626_v7 }
 0x164   : > { %618 = vst [vmem:[#allocation3 + $0x50] sm:$0x1f] %v616_v10 }
 0x165   : > { %1155 = vmatprep.subr.bf16.mxu0 %v1154_v11 }
 0x166   : > { %1157 = vmatpush1.bf16.msra.mxu0 %v1156_v12  ;;  %v630_v9 = vld [vmem:[#allocation3 + $0x48] sm:$0xff] }
 0x167   : > { %v1158_v14 = vpack.c.bf16 %v632_v13, %v630_v9 }
 0x168   : > { %v629_v15 = vld [vmem:[#allocation3 + $0x40] sm:$0xff] }
 0x169   : > { %1160 = vmatprep.subr.msk.bf16.mxu0 %vm1159_vm14, %v1158_v14 }
 0x16b   : > { %v631_v16 = vld [vmem:[#allocation3 + $0x50] sm:$0x1f] }
 0x16c   : > { %v1161_v17 = vpack.c.bf16 %v631_v16, %v629_v15 }
 0x16e   : > { %1163 = vmatpush1.bf16.msk.msra.mxu0 %vm1159_vm14, %v1161_v17 }
 0x171   : > { %1138 = vmatmul.mubr.msk.f32.vlgmr.msra.gmra.mrb[0].mxu0 %vm639_vm15, %v620_v19 }
 0x172   : > { %v637_v23 = vpop.permute.xlu1 %636 }
 0x244   : > { %v716_v24 = vpop.f32.mrb[0].mxu0 }
 0x245   : > { %v717_v25 = vadd.f32 %v716_v24, %v637_v23  ;;  %v718_v26 = vpop.f32.mrb[1].mxu0 }
 0x246   : > { %v719_v27 = vadd.f32 %v718_v26, %v637_v23 }
 0x247   : > { %v721_v28 = vmax.f32 %v717_v25, 0.0 }
 0x248   : > { %v722_v29 = vmax.f32 %v719_v27, 0.0 }
 0x24a   : > { %v725_v30 = vcombine.low %v721_v28, %v722_v29 }
 0x24c   : > { %v727_v31 = vadd.f32 %v725_v30, %v1568_v3  ;;  %v1394_v3 = vmov 7  }
 0x24e   : > { %731 = vrot.lane.b32.xlu0 %v727_v31, %s1381_s13  ;;  %v730_v32 = vcombine.high %v727_v31, %v727_v31  ;;  %728 = vst [vmem:[%s1686_s23] sm:$0xff] %v727_v31 }
 0x250   : > { %733 = vrot.lane.b32.xlu1 %v730_v32, %s1381_s13 }
 0x252   : > { %760 = vperm.xlu0 %1237, %v742_v33  }
 0x254   : > { %825 = vperm.xlu1 %1238, %v742_v33  }
 0x256   : > { %1240 = vset.pattern.permute.xlu0 %v1390_v56 }
 0x257   : > { %749 = vperm.xlu0 %1240, %v742_v33  }
 0x258   : > { %1239 = vset.pattern.permute.xlu1 %v1394_v3 }
 0x259   : > { %887 = vperm.xlu1 %1239, %v742_v33  }
 0x25b   : > { %1243 = vset.pattern.permute.xlu0 %v1395_v34 }
 0x25c   : > { %859 = vperm.xlu0 %1243, %v742_v33  }
 0x25d   : > { %1241 = vset.pattern.permute.xlu1 %v1396_v35 }
 0x25e   : > { %797 = vperm.xlu1 %1241, %v742_v33  }
 0x260   : > { %1245 = vset.pattern.permute.xlu0 %v1397_v36 }
 0x261   : > { %921 = vperm.xlu0 %1245, %v742_v33  }
 0x262   : > { %1242 = vset.pattern.permute.xlu1 %v1398_v37 }
 0x263   : > { %817 = vperm.xlu1 %1242, %v742_v33  }
 0x265   : > { %1247 = vset.pattern.permute.xlu0 %v1390_v56 }
 0x267   : > { %1244 = vset.pattern.permute.xlu1 %v1399_v38 }
 0x268   : > { %879 = vperm.xlu1 %1244, %v742_v33  }
 0x26c   : > { %1246 = vset.pattern.permute.xlu1 %v1390_v56 }
 0x2c0   : > { %v732_v39 = vpop.permute.xlu0 %731 }
 0x2c1   : > { %739 = vst.msk [vmem:[#allocation2] sm:$0xf] %vm369_vm6, %v732_v39 }
 0x2c2   : > { %v734_v40 = vpop.permute.xlu1 %733 }
 0x2c3   : > { %v735_v41 = vsel %vm364_vm3, %v732_v39, %v734_v40  ;;  %741 = vst.msk [vmem:[#allocation2 + $0x10] sm:$0xf] %vm372_vm4, %v734_v40 }
 0x2c4   : > { %740 = vst [vmem:[#allocation2 + $0x8] sm:$0xf] %v735_v41 }
 0x2c8   : > { %v756_v42 = vld [vmem:[#allocation2] sm:$0xf] }
 0x2c9   : > { %784 = vrot.lane.b32.xlu0 %v756_v42, %s1382_s18  ;;  %804 = vrot.lane.b32.xlu1 %v756_v42, %s1383_s16 }
 0x2ca   : > { %v758_v43 = vld [vmem:[#allocation2 + $0x10] sm:$0xf] }
 0x2cb   : > { %v757_v47 = vld [vmem:[#allocation2 + $0x8] sm:$0xf] }
 0x2cd   : > { %846 = vrot.lane.b32.xlu0 %v756_v42, %s1384_s19  ;;  %866 = vrot.lane.b32.xlu1 %v756_v42, %s1385_s20 }
 0x2d1   : > { %v761_v56 = vpop.permute.xlu0 %760  ;;  %908 = vrot.lane.b32.xlu1 %v756_v42, %s1386_s22  ;;  %788 = vrot.lane.b32.xlu0 %v758_v43, %s1382_s18 }
 0x2d2   : > { %v763_v44 = vmul.f32 %v761_v56, %v756_v42  ;;  %v764_v48 = vmul.f32 %v761_v56, %v757_v47  ;;  %v765_v51 = vmul.f32 %v761_v56, %v758_v43 }
 0x2d3   : > { %v826_v45 = vpop.permute.xlu1 %825 }
 0x2d4   : > { %v828_v46 = vmul.f32 %v826_v45, %v756_v42  ;;  %v829_v49 = vmul.f32 %v826_v45, %v757_v47  ;;  %v830_v53 = vmul.f32 %v826_v45, %v758_v43 }
 0x2d5   : > { %769 = vrot.lane.b32.xlu1 %v763_v44, %s1387_s10  ;;  %808 = vrot.lane.b32.xlu0 %v758_v43, %s1383_s16 }
 0x2d8   : > { %v888_v50 = vpop.permute.xlu1 %887 }
 0x2d9   : > { %850 = vrot.lane.b32.xlu0 %v758_v43, %s1384_s19  ;;  %834 = vrot.lane.b32.xlu1 %v828_v46, %s1388_s24  ;;  %v890_v52 = vmul.f32 %v888_v50, %v756_v42  ;;  %v892_v54 = vmul.f32 %v888_v50, %v758_v43  ;;  %v891_v55 = vmul.f32 %v888_v50, %v757_v47 }
 0x2dd   : > { %870 = vrot.lane.b32.xlu0 %v758_v43, %s1385_s20  ;;  %786 = vrot.lane.b32.xlu1 %v757_v47, %s1382_s18 }
 0x2e1   : > { %910 = vrot.lane.b32.xlu0 %v757_v47, %s1386_s22  ;;  %806 = vrot.lane.b32.xlu1 %v757_v47, %s1383_s16  ;;  %s1727_s16 = scalar_lea.hbm %s1858_s6, %s1148_s9 }
 0x2e5   : > { %771 = vrot.lane.b32.xlu0 %v764_v48, %s1387_s10  ;;  %848 = vrot.lane.b32.xlu1 %v757_v47, %s1384_s19  ;;  %s997_s19 = sshll.u32 %s1686_s23, 4  ;;  %s998_s19 = int_to_ptr.vmem [resolvable:$true] %s997_s19 }
 0x2e9   : > { %836 = vrot.lane.b32.xlu0 %v829_v49, %s1388_s24  ;;  %868 = vrot.lane.b32.xlu1 %v757_v47, %s1385_s20  ;;  %s978_s20 = scalar_lea.sflag [#allocation7], %s1551_s30 }
 0x2ed   : > { %773 = vrot.lane.b32.xlu1 %v765_v51, %s1387_s10  ;;  %896 = vrot.lane.b32.xlu0 %v890_v52, %s1389_s21  ;;  %s1279_s10 = scalar_lea.vmem %s998_s19, 128 }
 0x2ee   : > { %p1280_p6 = scmp.ne.s32.totalorder %s998_s19, %s1279_s10 }
 0x2f0   : > { %p1281_p13 = pnand %p1280_p6, %p1871_p12 }
 0x2f1   : > { %838 = vrot.lane.b32.xlu1 %v830_v53, %s1388_s24  ;;  %900 = vrot.lane.b32.xlu0 %v892_v54, %s1389_s21 }
 0x2f2   : > { %p1282_p7 = pneg %p1281_p13 }
 0x2f5   : > { %912 = vrot.lane.b32.xlu1 %v758_v43, %s1386_s22  ;;  %s1400_s22 = smov [#allocation8]  }
 0x2f6   : > { %s1283_s24 = sshll.u32 %s1400_s22, 4  ;;  %s1284_s24 = int_to_ptr.vmem [resolvable:$false] %s1283_s24 }
 0x2f7   : > { %p1286_p10 = scmp.lt.s32.totalorder %s998_s19, %s1284_s24 }
 0x2f9   : > { %898 = vrot.lane.b32.xlu1 %v891_v55, %s1389_s21  ;;  %s1285_s21 = scalar_lea.vmem %s1284_s24, 256 }
 0x2fa   : > { %p1287_p2 = scmp.lt.s32.totalorder %s1285_s21, %s1279_s10 }
 0x2fc   : > { %p1288_p4 = por %p1287_p2, %p1286_p10 }
 0x2fd   : > { %965 = vperm.xlu1 %1246, %v962_v58  }
 0x2fe   : > { %p1289_p5 = pnand %p1288_p4, %p1282_p7 }
 0x300   : > { %1292 = shalt.err (!%p1289_p5)
}
 0x301   : > { %s1293_s17 = scalar_lea.hbm %s1727_s16, 128  ;;  %s1297_s12 = scalar_lea.hbm %s1858_s6, 256 }
 0x302   : > { %p1294_p8 = scmp.ne.s32.totalorder %s1727_s16, %s1293_s17  ;;  %p1298_p1 = scmp.lt.u32.totalorder %s1727_s16, %s1858_s6 }
 0x303   : > { %p1299_p3 = scmp.lt.u32.totalorder %s1297_s12, %s1293_s17  ;;  %p1301_p6 = scmp.lt.u32.totalorder %s1293_s17, %s1727_s16 }
 0x304   : > { %p1295_p9 = pnand %p1294_p8, %p1871_p12 }
 0x305   : > { %p1300_p11 = por %p1299_p3, %p1298_p1 }
 0x306   : > { %p1296_p0 = pneg %p1295_p9 }
 0x307   : > { %p1302_p13 = por %p1301_p6, %p1300_p11 }
 0x309   : > { %p1303_p7 = pnand %p1302_p13, %p1296_p0 }
 0x30b   : > { %1306 = shalt.err (!%p1303_p7)
}
 0x30c   : > { %1166 = dma.vmem_to_hbm [thread:$0]  (%p1871_p12), %s998_s19, 128, %s1727_s16, %s978_s20   ;;  %v798_v59 = vpop.permute.xlu1 %797  ;;  %v750_v60 = vpop.permute.xlu0 %749  ;;  %v743_v17 = vld [vmem:[#allocation2] sm:$0xf]  ;;  %v744_v33 = vld [vmem:[#allocation2 + $0x8] sm:$0xf]  ;;  %vm1872_vm3 = vcmask 785408  }
 0x30d   : > { %v745_v23 = vsel %vm391_vm8, %v743_v17, 0.0  ;;  %v746_v38 = vsel %vm392_vm7, %v744_v33, 0.0  ;;  %vm1873_vm4 = vmmov %vm1872_vm3  ;;  %vm1874_vm6 = vcmask 769024   ;;  %s1134_s18 = sshll.u32 %s1551_s30, 1  ;;  %s1149_s16 = sshll.u32 %s1467_s5, 5 }
 0x30e   : > { %v752_v25 = vmul.f32 %v750_v60, %v745_v23  ;;  %v753_v40 = vmul.f32 %v750_v60, %v746_v38  ;;  %s320_s19 = scalar_lea.vmem [#allocation9], %s1134_s18  ;;  %s1808_s24 = scalar_lea.hbm %s1859_s7, %s1149_s16 }
 0x30f   : > { %s1011_s20 = sshll.u32 %s320_s19, 4  ;;  %s983_s21 = scalar_lea.sflag [#allocation10], %s1551_s30  ;;  %s1810_s20 = int_to_ptr.vmem [resolvable:$true] %s1011_s20 }
 0x310   : > { %v818_v61 = vpop.permute.xlu1 %817  ;;  %v1748_v62 = vpop.permute.xlu0 %859  ;;  %s1307_s5 = scalar_lea.vmem %s1810_s20, 32  ;;  %s1402_s17 = smov [#allocation9]  }
 0x311   : > { %p1308_p10 = scmp.ne.s32.totalorder %s1810_s20, %s1307_s5  ;;  %s1311_s23 = sshll.u32 %s1402_s17, 4  ;;  %s1312_s23 = int_to_ptr.vmem [resolvable:$false] %s1311_s23 }
 0x312   : > { %s1313_s25 = scalar_lea.vmem %s1312_s23, 64  ;;  %p1314_p5 = scmp.lt.s32.totalorder %s1810_s20, %s1312_s23 }
 0x313   : > { %p1309_p2 = pnand %p1308_p10, %p1871_p12  ;;  %p1315_p8 = scmp.lt.s32.totalorder %s1313_s25, %s1307_s5 }
 0x314   : > { %v1750_v63 = vpop.permute.xlu0 %921  ;;  %v1752_v1 = vpop.permute.xlu1 %879 }
 0x315   : > { %p1310_p4 = pneg %p1309_p2  ;;  %p1316_p9 = por %p1315_p8, %p1314_p5 }
 0x317   : > { %p1317_p0 = pnand %p1316_p9, %p1310_p4 }
 0x33b   : > { %v785_v4 = vpop.permute.xlu0 %784  ;;  %v805_v6 = vpop.permute.xlu1 %804 }
 0x33f   : > { %v847_v7 = vpop.permute.xlu0 %846  ;;  %v867_v8 = vpop.permute.xlu1 %866 }
 0x343   : > { %v789_v10 = vpop.permute.xlu0 %788  ;;  %v909_v11 = vpop.permute.xlu1 %908 }
 0x347   : > { %v809_v12 = vpop.permute.xlu0 %808  ;;  %v770_v9 = vpop.permute.xlu1 %769 }
 0x34b   : > { %v851_v13 = vpop.permute.xlu0 %850  ;;  %v835_v14 = vpop.permute.xlu1 %834 }
 0x34f   : > { %v871_v15 = vpop.permute.xlu0 %870  ;;  %v787_v16 = vpop.permute.xlu1 %786 }
 0x350   : > { %v790_v19 = vsel %vm453_vm9, %v785_v4, %v787_v16  ;;  %v791_v3 = vsel %vm453_vm9, %v787_v16, %v789_v10  ;;  %vm1875_vm9 = vmmov %vm1874_vm6 }
 0x351   : > { %v794_v24 = vsel %vm436_vm12, %v790_v19, 0.0  ;;  %v795_v39 = vsel %vm437_vm10, %v791_v3, 0.0  ;;  %v1401_v3 = vmov 1966171168  }
 0x352   : > { %v800_v30 = vmul.f32 %v798_v59, %v794_v24  ;;  %v801_v46 = vmul.f32 %v798_v59, %v795_v39  ;;  %v950_v39 = vshrl.u32 %v325_v5, 7 }
 0x353   : > { %v911_v21 = vpop.permute.xlu0 %910  ;;  %v807_v22 = vpop.permute.xlu1 %806 }
 0x354   : > { %v810_v26 = vsel %vm480_vm11, %v805_v6, %v807_v22  ;;  %v811_v36 = vsel %vm480_vm11, %v807_v22, %v809_v12  ;;  %vm928_vm11 = vcmask 1043456  }
 0x355   : > { %v814_v32 = vsel %vm391_vm8, %v810_v26, 0.0  ;;  %v815_v41 = vsel %vm392_vm7, %v811_v36, 0.0 }
 0x356   : > { %v820_v37 = vmul.f32 %v818_v61, %v814_v32  ;;  %v821_v49 = vmul.f32 %v818_v61, %v815_v41 }
 0x357   : > { %v772_v27 = vpop.permute.xlu0 %771  ;;  %v849_v28 = vpop.permute.xlu1 %848 }
 0x358   : > { %v775_v29 = vsel %vm420_vm0, %v770_v9, %v772_v27  ;;  %v852_v42 = vsel %vm533_vm13, %v847_v7, %v849_v28  ;;  %v853_v47 = vsel %vm533_vm13, %v849_v28, %v851_v13 }
 0x359   : > { %v779_v31 = vadd.f32 %v775_v29, %v752_v25  ;;  %v856_v50 = vsel %vm436_vm12, %v852_v42, 0.0  ;;  %v857_v60 = vsel %vm437_vm10, %v853_v47, 0.0 }
 0x35a   : > { %v862_v59 = vmul.f32 %v1748_v62, %v856_v50  ;;  %v863_v12 = vmul.f32 %v1748_v62, %v857_v60 }
 0x35b   : > { %v802_v34 = vadd.f32 %v800_v30, %v779_v31  ;;  %v869_v35 = vpop.permute.xlu1 %868  ;;  %v837_v43 = vpop.permute.xlu0 %836 }
 0x35c   : > { %v840_v51 = vsel %vm512_vm1, %v835_v14, %v837_v43  ;;  %v872_v53 = vsel %vm1872_vm3, %v867_v8, %v869_v35  ;;  %v873_v54 = vsel %vm1873_vm4, %v869_v35, %v871_v15  ;;  %v914_v8 = vsel %vm1874_vm6, %v909_v11, %v911_v21 }
 0x35d   : > { %v822_v56 = vadd.f32 %v820_v37, %v802_v34  ;;  %v876_v61 = vsel %vm391_vm8, %v872_v53, 0.0  ;;  %v877_v7 = vsel %vm392_vm7, %v873_v54, 0.0  ;;  %v918_v18 = vsel %vm436_vm12, %v914_v8, 0.0 }
 0x35e   : > { %v882_v16 = vmul.f32 %v1752_v1, %v876_v61  ;;  %v883_v17 = vmul.f32 %v1752_v1, %v877_v7  ;;  %vm1876_vm7 = vcmask 777216   ;;  %v947_v34 = vunpack.c.l.s4 %v1401_v3 }
 0x35f   : > { %v774_v44 = vpop.permute.xlu1 %773  ;;  %v844_v52 = vadd.f32 %v840_v51, %v822_v56  ;;  %v897_v4 = vpop.permute.xlu0 %896  ;;  %vm1877_vm8 = vmmov %vm1876_vm7 }
 0x360   : > { %v776_v45 = vsel %vm420_vm0, %v772_v27, %v774_v44 }
 0x361   : > { %v780_v48 = vadd.f32 %v776_v45, %v753_v40  ;;  %v864_v9 = vadd.f32 %v862_v59, %v844_v52  ;;  %v970_v45 = vsub.s32 0, %v950_v39 }
 0x363   : > { %v803_v55 = vadd.f32 %v801_v46, %v780_v48  ;;  %v839_v58 = vpop.permute.xlu1 %838  ;;  %v901_v22 = vpop.permute.xlu0 %900  ;;  %v884_v11 = vadd.f32 %v882_v16, %v864_v9 }
 0x364   : > { %v841_v10 = vsel %vm512_vm1, %v837_v43, %v839_v58 }
 0x365   : > { %v823_v6 = vadd.f32 %v821_v49, %v803_v55 }
 0x367   : > { %v845_v13 = vadd.f32 %v841_v10, %v823_v6  ;;  %v913_v14 = vpop.permute.xlu1 %912 }
 0x368   : > { %v915_v15 = vsel %vm1875_vm9, %v911_v21, %v913_v14  ;;  %v924_v21 = vmul.f32 %v1750_v63, %v918_v18 }
 0x369   : > { %v865_v20 = vadd.f32 %v863_v12, %v845_v13  ;;  %v919_v19 = vsel %vm437_vm10, %v915_v15, 0.0  ;;  %vm974_vm10 = vcmp.lt.s32.totalorder %v325_v5, 256 }
 0x36a   : > { %v925_v26 = vmul.f32 %v1750_v63, %v919_v19  ;;  %v948_v63 = vunpack.c.0.s8 %v947_v34 }
 0x36b   : > { %v885_v23 = vadd.f32 %v883_v17, %v865_v20  ;;  %v899_v62 = vpop.permute.xlu1 %898 }
 0x36c   : > { %v902_v24 = vsel %vm1876_vm7, %v897_v4, %v899_v62  ;;  %v903_v25 = vsel %vm1877_vm8, %v899_v62, %v901_v22  ;;  %v951_v56 = vsub.s32 %v948_v63, %v950_v39 }
 0x36d   : > { %v906_v1 = vadd.f32 %v902_v24, %v884_v11  ;;  %v907_v27 = vadd.f32 %v903_v25, %v885_v23 }
 0x36f   : > { %v926_v0 = vadd.f32 %v924_v21, %v906_v1  ;;  %v927_v28 = vadd.f32 %v925_v26, %v907_v27 }
 0x371   : > { %v929_v29 = vsel %vm928_vm11, %v926_v0, 0.0  ;;  %v936_v57 = vsel %vm928_vm11, %v927_v28, 0.0 }
 0x372   : > { %v930_v30 = vrot.slane %v929_v29, 4  ;;  %v937_v31 = vrot.slane %v936_v57, 4 }
 0x374   : > { %v931_v32 = vadd.f32 %v930_v30, %v929_v29  ;;  %v938_v33 = vadd.f32 %v937_v31, %v936_v57 }
 0x376   : > { %v932_v35 = vrot.slane %v931_v32, 2  ;;  %v939_v36 = vrot.slane %v938_v33, 2 }
 0x378   : > { %v933_v37 = vadd.f32 %v932_v35, %v931_v32  ;;  %v940_v38 = vadd.f32 %v939_v36, %v938_v33 }
 0x37a   : > { %v934_v40 = vrot.slane %v933_v37, 1  ;;  %v941_v41 = vrot.slane %v940_v38, 1 }
 0x37c   : > { %v935_v42 = vadd.f32 %v934_v40, %v933_v37  ;;  %v942_v43 = vadd.f32 %v941_v41, %v940_v38  ;;  %v966_v46 = vpop.permute.xlu1 %965 }
 0x37d   : > { %v971_v49 = vrot.slane %v966_v46, %v970_v45 }
 0x37e   : > { %v945_v44 = vcombine.low %v935_v42, %v942_v43 }
 0x380   : > { %v952_v47 = vrot.slane %v945_v44, %v951_v56 }
 0x382   : > { %v959_v48 = vrot.slane %v952_v47, %v951_v56 }
 0x384   : > { %v961_v50 = vadd.f32 %v959_v48, %v1566_v2 }
 0x386   : > { %v972_v51 = vadd.f32 %v971_v49, %v961_v50 }
 0x388   : > { %976 = vst.msk [vmem:[%s320_s19] sm:$0x3] %vm974_vm10, %v972_v51 }
 0x389   : > { %1320 = shalt.err (!%p1317_p0)
}
 0x38a   : > { %s1321_s30 = scalar_lea.hbm %s1808_s24, 32  ;;  %s1325_s13 = scalar_lea.hbm %s1859_s7, 64 }
 0x38b   : > { %p1322_p1 = scmp.ne.s32.totalorder %s1808_s24, %s1321_s30  ;;  %p1326_p6 = scmp.lt.u32.totalorder %s1808_s24, %s1859_s7 }
 0x38c   : > { %p1327_p13 = scmp.lt.u32.totalorder %s1325_s13, %s1321_s30  ;;  %p1329_p10 = scmp.lt.u32.totalorder %s1321_s30, %s1808_s24 }
 0x38d   : > { %p1323_p3 = pnand %p1322_p1, %p1871_p12 }
 0x38e   : > { %p1328_p7 = por %p1327_p13, %p1326_p6 }
 0x38f   : > { %p1324_p11 = pneg %p1323_p3 }
 0x390   : > { %p1330_p2 = por %p1329_p10, %p1328_p7 }
 0x392   : > { %p1331_p4 = pnand %p1330_p2, %p1324_p11 }
 0x394   : > { %1334 = shalt.err (!%p1331_p4)
}
 0x395   : > { %1167 = dma.vmem_to_hbm [thread:$0]  (%p1871_p12), %s1810_s20, 32, %s1808_s24, %s983_s21  }
 0x396 PF: > { %s1023_s19 = sand.u32 1, %s1365_s26   ;;  %p1878_p5 = scmp.ne.s32.totalorder %s1867_s15, 0 }
 0x397   : > { %p1879_p8 = scmp.ge.s32.totalorder %s1377_s29, 2  ;;  %s1024_s10 = scalar_lea.sflag [#allocation7], %s1023_s19 }
 0x399   : > { %p1175_p9 = pnand %p1879_p8, %p1878_p5 }
 0x39b   : > { %1356 = dma.done.wait (!%p1175_p9), %s1024_s10, 128  }
 0x39c   : > { %1358 = vsyncadd (!%p1175_p9), %s1024_s10, 4294967168  ;;  %s1033_s22 = scalar_lea.sflag [#allocation10], %s1023_s19 }
 0x39d   : > { %1360 = dma.done.wait (!%p1175_p9), %s1033_s22, 32  }
 0x39e   : > { %1362 = vsyncadd (!%p1175_p9), %s1033_s22, 4294967264  ;;  %p26_p12 = scmp.ge.s32.totalorder %s1471_s8, 4   ;;  %s1880_s26 = smov %s1369_s27 }
 0x39f   : > { %s1881_s27 = smov %s1373_s28  ;;  %s1882_s28 = smov %s1483_s11 }
 0x3a0   : > { %s1883_s29 = smov %s1471_s8  ;;  %28 = sbr.rel (!%p26_p12) target bundleno = 10 (0xa), region = 110 }
 0x3a7   :  { %1038 = vsyncpa [#allocation6], 1 }
 0x3a8   :  { %1040 = vsyncpa [#allocation6 + $0x1], 1 }
 0x3a9   :  { %1041 = vsyncpa [#allocation7], 1 }
 0x3aa   :  { %1043 = vsyncpa [#allocation7 + $0x1], 1 }
 0x3ab   :  { %1044 = vsyncpa [#allocation10], 1 }
 0x3ac   :  { %1046 = vsyncpa [#allocation10 + $0x1], 1 }

</bundles_post_ra>
